<compile_context>
chip_gen: v7x
topology: tpu7x:2x2x1
jax: 0.10.0
libtpu: 0.0.40
codegen_flags: <defaults>
</compile_context>

<pallas_src>
import functools
import math

import jax
import jax.numpy as jnp
from jax.experimental import pallas as pl
from jax.experimental.pallas import tpu as pltpu


_NEG_INF = -1e30  # finite "minus infinity": exp(a - a) never produces NaN


def _layernorm(x, gamma, beta, eps=1e-5):
    x = x.astype(jnp.float32)
    mu = jnp.mean(x, axis=-1, keepdims=True)
    var = jnp.mean((x - mu) ** 2, axis=-1, keepdims=True)
    return (x - mu) * jax.lax.rsqrt(var + eps) * gamma + beta


# --------------------- pass 1: LayerNorm + fused QKV projection ---------------------

def qkv_kernel(x_ref, g1_ref, b1_ref, wqkv_ref, q_ref, k_ref, v_ref):
    # x_ref: (1, TS, D) f32, wqkv_ref: (D, 3D) bf16 (1/sqrt(hd) folded into Q columns)
    D = x_ref.shape[2]
    xn = _layernorm(x_ref[0], g1_ref[0], b1_ref[0]).astype(jnp.bfloat16)
    qkv = jnp.dot(xn, wqkv_ref[...], preferred_element_type=jnp.float32)   # (TS, 3D)
    q_ref[0] = qkv[:, 0 * D:1 * D].astype(jnp.bfloat16)
    k_ref[0] = qkv[:, 1 * D:2 * D].astype(jnp.bfloat16)
    v_ref[0] = qkv[:, 2 * D:3 * D].astype(jnp.bfloat16)


# -------- pass 2: flash causal attention + proj + residual + LN + GELU FFN ----------

def attn_ffn_kernel(x_ref,           # (1, TQ, D) f32  raw x tile (residual 1)
                    q_ref,           # (1, TQ, D) bf16 Q tile (scale pre-folded)
                    k_ref, v_ref,    # (1, S,  D) bf16 full K / V for this batch
                    wproj_ref,       # (D, D)    bf16
                    g2_ref, b2_ref,  # (1, D)    ln_ffnn gamma/beta
                    win_ref,         # (D, 4D)   bf16
                    wout_ref,        # (4D, D)   bf16
                    o_ref,           # (1, TQ, D)
                    *, n_heads: int, kv_block: int):
    TQ, D = x_ref.shape[1], x_ref.shape[2]
    H, hd, TK = n_heads, D // n_heads, kv_block
    qi = pl.program_id(1)

    q = q_ref[0]                                       # (TQ, D) bf16
    dn = (((1,), (1,)), ((), ()))                      # q . k^T : contract head dim

    # Causal mask for the diagonal KV tile only (prefix tiles are fully visible).
    row = jax.lax.broadcasted_iota(jnp.int32, (TQ, TK), 0)
    col = jax.lax.broadcasted_iota(jnp.int32, (TQ, TK), 1)
    visible = col <= row                               # valid because TK == TQ
    diag_start = pl.multiple_of(qi * TK, TK)

    def online_update(s, vh, m, l, acc):
        m_new = jnp.maximum(m, jnp.max(s, axis=-1, keepdims=True))
        alpha = jnp.exp(m - m_new)
        p = jnp.exp(s - m_new)
        l_new = alpha * l + jnp.sum(p, axis=-1, keepdims=True)
        acc_new = alpha * acc + jnp.dot(p.astype(jnp.bfloat16), vh,
                                        preferred_element_type=jnp.float32)
        return m_new, l_new, acc_new

    y_heads = []
    for h in range(H):                                  # static unroll; 1 head at a time
        lane = pl.ds(h * hd, hd)                        # static lane window
        qh = q[:, h * hd:(h + 1) * hd]                  # (TQ, hd) bf16

        def prefix_body(kb, carry, lane=lane, qh=qh):
            m, l, acc = carry
            start = pl.multiple_of(kb * TK, TK)
            kh = k_ref[0, pl.ds(start, TK), lane]       # (TK, hd) bf16
            vh = v_ref[0, pl.ds(start, TK), lane]
            s = jax.lax.dot_general(qh, kh, dn,
                                    preferred_element_type=jnp.float32)   # (TQ, TK)
            return online_update(s, vh, m, l, acc)

        carry0 = (jnp.full((TQ, 1), _NEG_INF, jnp.float32),
                  jnp.zeros((TQ, 1), jnp.float32),
                  jnp.zeros((TQ, hd), jnp.float32))
        # Unmasked loop over the fully-visible causal prefix [0, qi).
        m, l, acc = jax.lax.fori_loop(0, qi, prefix_body, carry0)

        # Diagonal tile (kb == qi): the only one that needs a causal mask.
        kh = k_ref[0, pl.ds(diag_start, TK), lane]
        vh = v_ref[0, pl.ds(diag_start, TK), lane]
        s = jax.lax.dot_general(qh, kh, dn, preferred_element_type=jnp.float32)
        s = jnp.where(visible, s, _NEG_INF)
        m, l, acc = online_update(s, vh, m, l, acc)

        # (dropout_attn is identity in eval mode)
        y_heads.append(acc * pl.reciprocal(l, approx=True))   # (TQ, hd) f32

    y = jnp.concatenate(y_heads, axis=-1).astype(jnp.bfloat16)   # (TQ, D)
    attn = jnp.dot(y, wproj_ref[...], preferred_element_type=jnp.float32)
    # (dropout_proj is identity in eval mode)

    h1 = x_ref[0].astype(jnp.float32) + attn                     # residual 1

    hn = _layernorm(h1, g2_ref[0], b2_ref[0]).astype(jnp.bfloat16)
    f = jnp.dot(hn, win_ref[...], preferred_element_type=jnp.float32)    # (TQ, 4D)
    f = jax.nn.gelu(f, approximate=False)                        # nn.GELU() exact
    ff = jnp.dot(f.astype(jnp.bfloat16), wout_ref[...],
                 preferred_element_type=jnp.float32)             # (TQ, D)
    # (dropout is identity in eval mode)

    o_ref[0] = (h1 + ff).astype(o_ref.dtype)                     # residual 2


# ------------------------------- VMEM budgeting -------------------------------------

def _qkv_vmem_bytes(TS, D):
    bf16, f32 = 2, 4
    io = 2 * TS * D * f32 + 2 * 3 * TS * D * bf16                # x in, q/k/v out (x2 buf)
    wts = 2 * (3 * D * D * bf16 + 4 * D * f32)                   # wqkv + LN params
    tmp = TS * 3 * D * f32 + 2 * TS * D * f32
    return io + wts + tmp


def _attn_vmem_bytes(S, TQ, D):
    bf16, f32 = 2, 4
    io = 2 * (TQ * D * f32 + TQ * D * bf16 + 2 * S * D * bf16 + TQ * D * f32)
    wts = 2 * (9 * D * D * bf16 + 4 * D * f32)                   # Wproj/Win/Wout + LN
    tmp = 2 * TQ * 4 * D * f32 + 3 * TQ * TQ * f32 + 4 * TQ * D * f32
    return io + wts + tmp


def _vmem_limit(nbytes):
    # Accurate estimate + 25% headroom; floor 32 MiB, cap 100 MiB (v5e/v6e have
    # 128 MiB physical; on v7x the estimate itself must stay under 64 MiB).
    return int(min(max(int(nbytes * 1.25), 32 << 20), 100 << 20))


# ------------------------------------ wrapper ---------------------------------------

def transformer_block(x, params, n_heads, *, q_block=128):
    """TransformerBlock.forward (eval mode). q_block: 128 for v5e, 256 for v6e/v7x."""
    B, S, D = x.shape
    g1, b1, wqkv_t, wproj_t, g2, b2, win_t, wout_t = params
    assert D % n_heads == 0
    hd = D // n_heads

    TQ = min(q_block, S)
    assert S % TQ == 0 and (TQ == S or TQ % 8 == 0)
    nq = S // TQ
    TK = TQ                      # diagonal-tile causal masking assumes square tiles

    # Fold 1/sqrt(hd) into the Q columns of the fused QKV weight; ship weights as bf16
    # (f32 accumulation happens on the MXU in-kernel).
    scale = 1.0 / math.sqrt(hd)
    wqkv = jnp.concatenate([wqkv_t[:, :D] * scale, wqkv_t[:, D:]], axis=1)
    wqkv = wqkv.astype(jnp.bfloat16)
    wproj = wproj_t.astype(jnp.bfloat16)
    win = win_t.astype(jnp.bfloat16)
    wout = wout_t.astype(jnp.bfloat16)

    # Grid-invariant blocks (weights / LN params): constant index_map -> no re-DMA.
    const = lambda shape: pl.BlockSpec(shape, lambda b, s: (0,) * len(shape))

    # ---- pass 1: LN + QKV projection, computed exactly once per token -------------
    q, k, v = pl.pallas_call(
        qkv_kernel,
        out_shape=tuple(jax.ShapeDtypeStruct((B, S, D), jnp.bfloat16) for _ in range(3)),
        grid_spec=pltpu.PrefetchScalarGridSpec(
            num_scalar_prefetch=0,
            grid=(B, nq),
            in_specs=[
                pl.BlockSpec((1, TQ, D), lambda b, s: (b, s, 0)),   # x tile
                const((1, D)), const((1, D)),                       # ln_atten gamma/beta
                const((D, 3 * D)),                                  # fused Wqkv (scaled Q)
            ],
            out_specs=tuple(pl.BlockSpec((1, TQ, D), lambda b, s: (b, s, 0))
                            for _ in range(3)),
        ),
        compiler_params=pltpu.CompilerParams(
            dimension_semantics=("parallel", "parallel"),
            vmem_limit_bytes=_vmem_limit(_qkv_vmem_bytes(TQ, D)),
        ),
    )(x, g1, b1, wqkv)

    # ---- pass 2: flash causal attention + projection + residual + FFN -------------
    kernel = functools.partial(attn_ffn_kernel, n_heads=n_heads, kv_block=TK)
    out = pl.pallas_call(
        kernel,
        out_shape=jax.ShapeDtypeStruct((B, S, D), x.dtype),
        grid_spec=pltpu.PrefetchScalarGridSpec(
            num_scalar_prefetch=0,
            grid=(B, nq),
            in_specs=[
                pl.BlockSpec((1, TQ, D), lambda b, s: (b, s, 0)),   # x tile (residual)
                pl.BlockSpec((1, TQ, D), lambda b, s: (b, s, 0)),   # Q tile (bf16)
                pl.BlockSpec((1, S, D), lambda b, s: (b, 0, 0)),    # K full (bf16)
                pl.BlockSpec((1, S, D), lambda b, s: (b, 0, 0)),    # V full (bf16)
                const((D, D)),                                      # Wproj
                const((1, D)), const((1, D)),                       # ln_ffnn gamma/beta
                const((D, 4 * D)),                                  # layer_in
                const((4 * D, D)),                                  # layer_out
            ],
            out_specs=pl.BlockSpec((1, TQ, D), lambda b, s: (b, s, 0)),
        ),
        compiler_params=pltpu.CompilerParams(
            # batch and query-tile axes are independent -> megacore / v7x 2-TC split.
            dimension_semantics=("parallel", "parallel"),
            vmem_limit_bytes=_vmem_limit(_attn_vmem_bytes(S, TQ, D)),
        ),
    )(x, q, k, v, wproj, g2, b2, win, wout)
    return out


# --------------------------- params / reference / test ------------------------------

def init_params(key, n_dims):
    """Deterministic synthetic parameters (bias=False, f32 master weights)."""
    D = n_dims
    ks = jax.random.split(key, 4)

    def lin(k, fan_in, fan_out):
        # PyTorch Linear init: U(-1/sqrt(fan_in), 1/sqrt(fan_in)); stored (out,in),
        # we return the transpose (in,out) so the kernel computes x @ W^T.
        bound = 1.0 / math.sqrt(fan_in)
        w = jax.random.uniform(k, (fan_out, fan_in), jnp.float32, -bound, bound)
        return jnp.transpose(w)

    g1 = jnp.ones((1, D), jnp.float32)
    b1 = jnp.zeros((1, D), jnp.float32)
    g2 = jnp.ones((1, D), jnp.float32)
    b2 = jnp.zeros((1, D), jnp.float32)
    wqkv_t = lin(ks[0], D, 3 * D)     # (D, 3D)
    wproj_t = lin(ks[1], D, D)        # (D, D)
    win_t = lin(ks[2], D, 4 * D)      # (D, 4D)
    wout_t = lin(ks[3], 4 * D, D)     # (4D, D)
    return (g1, b1, wqkv_t, wproj_t, g2, b2, win_t, wout_t)


def reference_block(x, params, n_heads):
    """Pure-JAX f32 reference of TransformerBlock.forward (eval mode)."""
    g1, b1, wqkv_t, wproj_t, g2, b2, win_t, wout_t = params
    B, S, D = x.shape
    hd = D // n_heads

    def ln(v, g, b):
        mu = jnp.mean(v, -1, keepdims=True)
        var = jnp.mean((v - mu) ** 2, -1, keepdims=True)
        return (v - mu) / jnp.sqrt(var + 1e-5) * g + b

    xn = ln(x, g1[0], b1[0])
    qkv = xn @ wqkv_t
    q, k, v = jnp.split(qkv, 3, axis=-1)
    q = q.reshape(B, S, n_heads, hd).transpose(0, 2, 1, 3)
    k = k.reshape(B, S, n_heads, hd).transpose(0, 2, 1, 3)
    v = v.reshape(B, S, n_heads, hd).transpose(0, 2, 1, 3)
    att = jnp.einsum('bhqd,bhkd->bhqk', q, k) / math.sqrt(hd)
    mask = jnp.tril(jnp.ones((S, S), bool))
    att = jnp.where(mask[None, None], att, -jnp.inf)
    att = jax.nn.softmax(att, axis=-1)
    y = jnp.einsum('bhqk,bhkd->bhqd', att, v)
    y = y.transpose(0, 2, 1, 3).reshape(B, S, D) @ wproj_t
    h = x + y
    hn = ln(h, g2[0], b2[0])
    f = jax.nn.gelu(hn @ win_t, approximate=False) @ wout_t
    return h + f


if __name__ == "__main__":
    # Small but layout-friendly shapes: head_dim = D/H = 128 (lane-tile-aligned head
    # slices, no masked stores), S = 2 query tiles of 128 so the causal prefix loop,
    # the diagonal-only mask, and both "parallel" grid axes are exercised.
    B, S, D, H = 2, 256, 256, 2   # batch, seq (== max_len), n_dims, n_heads

    key = jax.random.PRNGKey(0)
    kx, kp = jax.random.split(key)
    x = jax.random.normal(kx, (B, S, D), jnp.float32)
    params = init_params(kp, D)

    out = jax.block_until_ready(transformer_block(x, params, H, q_block=128))

    ref = reference_block(x, params, H)
    assert out.shape == (B, S, D)
    # bf16 matmul operands + approx reciprocal -> looser tolerance vs f32 reference.
    assert jnp.allclose(out, ref, atol=5e-2, rtol=5e-2), \
        f"mismatch vs JAX reference (max abs err {jnp.max(jnp.abs(out - ref)):.4g})"

    # TODO(synk): training-mode dropout (p=0.2) is not implemented; kernels are eval-mode.
    print("KERNEL_OK")
</pallas_src>

<mosaic_0001>
module attributes {stable_mosaic.version = 11 : i64} {
  func.func @qkv_kernel(%arg0: i32, %arg1: i32, %arg2: memref<1x128x256xf32, #tpu.memory_space<vmem>>, %arg3: memref<1x256xf32, #tpu.memory_space<vmem>>, %arg4: memref<1x256xf32, #tpu.memory_space<vmem>>, %arg5: memref<256x768xbf16, #tpu.memory_space<vmem>>, %arg6: memref<1x128x256xbf16, #tpu.memory_space<vmem>>, %arg7: memref<1x128x256xbf16, #tpu.memory_space<vmem>>, %arg8: memref<1x128x256xbf16, #tpu.memory_space<vmem>>) attributes {dimension_semantics = [#tpu.dimension_semantics<parallel>, #tpu.dimension_semantics<parallel>], iteration_bounds = array<i64: 2, 2>, scalar_prefetch = 0 : i64, scratch_operands = 0 : i64, tpu.core_type = #tpu.core_type<tc>, window_params = [{transform_indices = @transform_0, window_bounds = array<i64: 1, 128, 256>}, {pipeline_mode = #tpu.pipeline_mode<synchronous>, transform_indices = @transform_1, window_bounds = array<i64: 1, 256>}, {pipeline_mode = #tpu.pipeline_mode<synchronous>, transform_indices = @transform_2, window_bounds = array<i64: 1, 256>}, {pipeline_mode = #tpu.pipeline_mode<synchronous>, transform_indices = @transform_3, window_bounds = array<i64: 256, 768>}, {transform_indices = @transform_4, window_bounds = array<i64: 1, 128, 256>}, {transform_indices = @transform_5, window_bounds = array<i64: 1, 128, 256>}, {transform_indices = @transform_6, window_bounds = array<i64: 1, 128, 256>}]} {
    %c0 = arith.constant 0 : index
    %c0_0 = arith.constant 0 : index
    %c0_1 = arith.constant 0 : index
    %0 = vector.load %arg2[%c0, %c0_0, %c0_1] : memref<1x128x256xf32, #tpu.memory_space<vmem>>, vector<1x128x256xf32>
    %1 = vector.shape_cast %0 : vector<1x128x256xf32> to vector<128x256xf32>
    %c0_2 = arith.constant 0 : index
    %c0_3 = arith.constant 0 : index
    %2 = vector.load %arg3[%c0_2, %c0_3] : memref<1x256xf32, #tpu.memory_space<vmem>>, vector<1x256xf32>
    %3 = vector.shape_cast %2 : vector<1x256xf32> to vector<256xf32>
    %c0_4 = arith.constant 0 : index
    %c0_5 = arith.constant 0 : index
    %4 = vector.load %arg4[%c0_4, %c0_5] : memref<1x256xf32, #tpu.memory_space<vmem>>, vector<1x256xf32>
    %5 = vector.shape_cast %4 : vector<1x256xf32> to vector<256xf32>
    %cst = arith.constant dense<0.000000e+00> : vector<128xf32>
    %6 = vector.multi_reduction <add>, %1, %cst [1] : vector<128x256xf32> to vector<128xf32>
    %7 = vector.shape_cast %6 : vector<128xf32> to vector<128x1xf32>
    %cst_6 = arith.constant 2.560000e+02 : f32
    %8 = vector.broadcast %cst_6 : f32 to vector<128x1xf32>
    %9 = arith.divf %7, %8 : vector<128x1xf32>
    %10 = vector.broadcast %9 : vector<128x1xf32> to vector<128x256xf32>
    %11 = arith.subf %1, %10 : vector<128x256xf32>
    %12 = arith.mulf %11, %11 : vector<128x256xf32>
    %cst_7 = arith.constant dense<0.000000e+00> : vector<128xf32>
    %13 = vector.multi_reduction <add>, %12, %cst_7 [1] : vector<128x256xf32> to vector<128xf32>
    %14 = vector.shape_cast %13 : vector<128xf32> to vector<128x1xf32>
    %cst_8 = arith.constant 2.560000e+02 : f32
    %15 = vector.broadcast %cst_8 : f32 to vector<128x1xf32>
    %16 = arith.divf %14, %15 : vector<128x1xf32>
    %17 = vector.broadcast %9 : vector<128x1xf32> to vector<128x256xf32>
    %18 = arith.subf %1, %17 : vector<128x256xf32>
    %cst_9 = arith.constant 9.99999974E-6 : f32
    %19 = vector.broadcast %cst_9 : f32 to vector<128x1xf32>
    %20 = arith.addf %16, %19 : vector<128x1xf32>
    %21 = math.rsqrt %20 : vector<128x1xf32>
    %22 = vector.broadcast %21 : vector<128x1xf32> to vector<128x256xf32>
    %23 = arith.mulf %18, %22 : vector<128x256xf32>
    %24 = vector.shape_cast %3 : vector<256xf32> to vector<1x256xf32>
    %25 = vector.broadcast %24 : vector<1x256xf32> to vector<128x256xf32>
    %26 = arith.mulf %23, %25 : vector<128x256xf32>
    %27 = vector.shape_cast %5 : vector<256xf32> to vector<1x256xf32>
    %28 = vector.broadcast %27 : vector<1x256xf32> to vector<128x256xf32>
    %29 = arith.addf %26, %28 : vector<128x256xf32>
    %30 = arith.truncf %29 : vector<128x256xf32> to vector<128x256xbf16>
    %c0_10 = arith.constant 0 : index
    %c0_11 = arith.constant 0 : index
    %31 = vector.load %arg5[%c0_10, %c0_11] : memref<256x768xbf16, #tpu.memory_space<vmem>>, vector<256x768xbf16>
    %cst_12 = arith.constant dense<0.000000e+00> : vector<128x768xf32>
    %32 = tpu.matmul %30, %31, %cst_12 {dimension_numbers = #tpu.dot_dimension_numbers<[1], [0], [0], [1], [0, 0, 1, 1], [], []>} : vector<128x256xbf16>, vector<256x768xbf16>, vector<128x768xf32> -> vector<128x768xf32>
    %33 = vector.extract_strided_slice %32 {offsets = [0, 0], sizes = [128, 256], strides = [1, 1]} : vector<128x768xf32> to vector<128x256xf32>
    %34 = arith.truncf %33 : vector<128x256xf32> to vector<128x256xbf16>
    %c0_13 = arith.constant 0 : index
    %c0_14 = arith.constant 0 : index
    %c0_15 = arith.constant 0 : index
    %35 = vector.load %arg6[%c0_13, %c0_14, %c0_15] : memref<1x128x256xbf16, #tpu.memory_space<vmem>>, vector<1x128x256xbf16>
    %36 = vector.shape_cast %35 : vector<1x128x256xbf16> to vector<128x256xbf16>
    %37 = vector.shape_cast %34 : vector<128x256xbf16> to vector<1x128x256xbf16>
    tpu.vector_store %arg6[%c0_13, %c0_14, %c0_15], %37 {strides = array<i32>} : memref<1x128x256xbf16, #tpu.memory_space<vmem>>, vector<1x128x256xbf16>,
    %38 = vector.extract_strided_slice %32 {offsets = [0, 256], sizes = [128, 256], strides = [1, 1]} : vector<128x768xf32> to vector<128x256xf32>
    %39 = arith.truncf %38 : vector<128x256xf32> to vector<128x256xbf16>
    %c0_16 = arith.constant 0 : index
    %c0_17 = arith.constant 0 : index
    %c0_18 = arith.constant 0 : index
    %40 = vector.load %arg7[%c0_16, %c0_17, %c0_18] : memref<1x128x256xbf16, #tpu.memory_space<vmem>>, vector<1x128x256xbf16>
    %41 = vector.shape_cast %40 : vector<1x128x256xbf16> to vector<128x256xbf16>
    %42 = vector.shape_cast %39 : vector<128x256xbf16> to vector<1x128x256xbf16>
    tpu.vector_store %arg7[%c0_16, %c0_17, %c0_18], %42 {strides = array<i32>} : memref<1x128x256xbf16, #tpu.memory_space<vmem>>, vector<1x128x256xbf16>,
    %43 = vector.extract_strided_slice %32 {offsets = [0, 512], sizes = [128, 256], strides = [1, 1]} : vector<128x768xf32> to vector<128x256xf32>
    %44 = arith.truncf %43 : vector<128x256xf32> to vector<128x256xbf16>
    %c0_19 = arith.constant 0 : index
    %c0_20 = arith.constant 0 : index
    %c0_21 = arith.constant 0 : index
    %45 = vector.load %arg8[%c0_19, %c0_20, %c0_21] : memref<1x128x256xbf16, #tpu.memory_space<vmem>>, vector<1x128x256xbf16>
    %46 = vector.shape_cast %45 : vector<1x128x256xbf16> to vector<128x256xbf16>
    %47 = vector.shape_cast %44 : vector<128x256xbf16> to vector<1x128x256xbf16>
    tpu.vector_store %arg8[%c0_19, %c0_20, %c0_21], %47 {strides = array<i32>} : memref<1x128x256xbf16, #tpu.memory_space<vmem>>, vector<1x128x256xbf16>,
    return
  }
  func.func @transform_0(%arg0: i32, %arg1: i32) -> (i32, i32, i32) {
    %c0_i32 = arith.constant 0 : i32
    %c0_i32_0 = arith.constant 0 : i32
    return %arg0, %arg1, %c0_i32 : i32, i32, i32
  }
  func.func @transform_1(%arg0: i32, %arg1: i32) -> (i32, i32) {
    %c0_i32 = arith.constant 0 : i32
    %c0_i32_0 = arith.constant 0 : i32
    %c0_i32_1 = arith.constant 0 : i32
    return %c0_i32, %c0_i32_0 : i32, i32
  }
  func.func @transform_2(%arg0: i32, %arg1: i32) -> (i32, i32) {
    %c0_i32 = arith.constant 0 : i32
    %c0_i32_0 = arith.constant 0 : i32
    %c0_i32_1 = arith.constant 0 : i32
    return %c0_i32, %c0_i32_0 : i32, i32
  }
  func.func @transform_3(%arg0: i32, %arg1: i32) -> (i32, i32) {
    %c0_i32 = arith.constant 0 : i32
    %c0_i32_0 = arith.constant 0 : i32
    %c0_i32_1 = arith.constant 0 : i32
    return %c0_i32, %c0_i32_0 : i32, i32
  }
  func.func @transform_4(%arg0: i32, %arg1: i32) -> (i32, i32, i32) {
    %c0_i32 = arith.constant 0 : i32
    %c0_i32_0 = arith.constant 0 : i32
    return %arg0, %arg1, %c0_i32 : i32, i32, i32
  }
  func.func @transform_5(%arg0: i32, %arg1: i32) -> (i32, i32, i32) {
    %c0_i32 = arith.constant 0 : i32
    %c0_i32_0 = arith.constant 0 : i32
    return %arg0, %arg1, %c0_i32 : i32, i32, i32
  }
  func.func @transform_6(%arg0: i32, %arg1: i32) -> (i32, i32, i32) {
    %c0_i32 = arith.constant 0 : i32
    %c0_i32_0 = arith.constant 0 : i32
    return %arg0, %arg1, %c0_i32 : i32, i32, i32
  }
}

</mosaic_0001>

<bundles_post_ra>
// kernel: tpu_custom_call.1
= control target key start
LH: loop header
LB: loop body
LE: loop exit
PB: predicated region body
PF: predicated region fallthrough
CT: control target
= control target key end

     0   :  { %s3862_s0 = inlined_call_operand.hbm [shape: f32[2,256,256], index: 0, kind: input, shape index: {}]   ;;  %s3863_s1 = inlined_call_operand.vmem [shape: f32[1,256], index: 1, kind: input, shape index: {}]   ;;  %s3864_s2 = inlined_call_operand.vmem [shape: f32[1,256], index: 2, kind: input, shape index: {}]   ;;  %s3865_s3 = inlined_call_operand.hbm [shape: bf16[256,768], index: 3, kind: input, shape index: {}]   ;;  %s3866_s4 = inlined_call_operand.hbm [shape: bf16[2,256,256], index: 4, kind: output, shape index: {0}]   ;;  %s3867_s5 = inlined_call_operand.hbm [shape: bf16[2,256,256], index: 5, kind: output, shape index: {1}]   ;;  %s3868_s6 = inlined_call_operand.hbm [shape: bf16[2,256,256], index: 6, kind: output, shape index: {2}]  }
   0x1   :  { %3880 = sst [smem:[#allocation20_spill]] %s3865_s3 }
   0x2   :  { %3881 = sst [smem:[#allocation21_spill]] %s3866_s4 }
   0x3   :  { %3882 = sst [smem:[#allocation22_spill]] %s3868_s6 }
   0x4   :  { %12 = vsyncpa [#allocation3], 0 }
   0x5   :  { %14 = vsyncpa [#allocation3 + $0x1], 0 }
   0x6   :  { %15 = vsyncpa [#allocation6], 0 }
   0x7   :  { %16 = vsyncpa [#allocation4], 0 }
   0x8   :  { %18 = vsyncpa [#allocation4 + $0x1], 0 }
   0x9   :  { %19 = vsyncpa [#allocation9], 0 }
   0xa   :  { %21 = vsyncpa [#allocation9 + $0x1], 0  ;;  %s3016_s21 = smov 0   ;;  %s3018_s22 = smov 0  }
   0xb   :  { %s3020_s23 = smov 0   ;;  %s3022_s24 = smov 0  }
   0xc   :  { %s3024_s25 = smov 0   ;;  %s3026_s26 = smov 0  }
   0xd   :  { %s3028_s27 = smov 0   ;;  %s3030_s28 = smov 0  }
   0xe LB: > { %3883 = sst [smem:[#allocation15_spill]] %s2940_s21  ;;  %s3057_s29 = sadd.s32 4294967295, %s2968_s28   ;;  %s2968_s28 = sphi %s3030_s28, %s27_s28   ;;  %s2964_s27 = sphi %s3028_s27, %s3914_s27   ;;  %s2960_s26 = sphi %s3026_s26, %s3908_s26   ;;  %s2956_s25 = sphi %s3024_s25, %s3913_s25   ;;  %s2952_s24 = sphi %s3022_s24, %s3907_s24   ;;  %s2948_s23 = sphi %s3020_s23, %s3912_s23   ;;  %s2944_s22 = sphi %s3018_s22, %s3911_s22   ;;  %s2940_s21 = sphi %s3016_s21, %s3910_s21  }
   0xf   : > { %3884 = sst [smem:[#allocation16_spill]] %s2960_s26  ;;  %s3872_s30 = sadd.s32 4294967294, %s2968_s28  }
  0x10   : > { %p61_p0 = scmp.ne.s32.totalorder %s2944_s22, %s2940_s21  ;;  %p3869_p1 = scmp.eq.s32.totalorder %s3057_s29, 0 }
  0x11   : > { %p156_p3 = scmp.eq.s32.totalorder %s3872_s30, 3  ;;  %p2208_p5 = scmp.ge.s32.totalorder %s2968_s28, 1 }
  0x12   : > { %p3068_p4 = por %p3869_p1, %p61_p0  ;;  %p219_p7 = scmp.lt.s32.totalorder %s2968_s28, 5 }
  0x13   : > { %p3073_p6 = por %p156_p3, %p61_p0  ;;  %s2970_s10 = smov [#allocation5]  }
  0x14   : > { %s3885_s7 = scalar_select %p3068_p4, 1, 0 }
  0x15   : > { %s3886_s8 = scalar_select %p3073_p6, 1, 0 }
  0x16   : > { %p3078_p8 = pnand %p2208_p5, %p219_p7  ;;  %s237_s11 = sshll.u32 %s2970_s10, 4  ;;  %s238_s11 = int_to_ptr.vmem [resolvable:$true] %s237_s11 }
  0x17   : > { %3887 = sst [smem:[#allocation17_spill]] %s3886_s8  ;;  %s3890_s3 = sld [smem:[#allocation20_spill]] }
  0x18   : > { %s3888_s9 = scalar_select %p3078_p8, 1, 0 }
  0x19   : > { %p2479_p9 = pneg %p3078_p8 }
  0x1b   : > { %p3086_p10 = pnand %p2479_p9, %p3869_p1 }
  0x1d   : > { %s2748_s15 = scalar_lea.hbm %s3890_s3, 12288  ;;  %p2750_p12 = pneg %p3086_p10 }
  0x1e   : > { %p2749_p11 = scmp.ne.s32.totalorder %s3890_s3, %s2748_s15  ;;  %p2755_p3 = scmp.lt.u32.totalorder %s2748_s15, %s3890_s3 }
  0x20   : > { %p2751_p13 = pnand %p2750_p12, %p2749_p11 }
  0x22   : > { %p2752_p0 = pneg %p2751_p13 }
  0x24   : > { %p2757_p5 = pnand %p2755_p3, %p2752_p0 }
  0x26   : > { %2760 = shalt.err (!%p2757_p5)
}
  0x27   : > { %s2761_s20 = scalar_lea.vmem %s238_s11, 12288  ;;  %p2769_p2 = scmp.lt.s32.totalorder %s238_s11, %s238_s11 }
  0x28   : > { %p2762_p7 = scmp.ne.s32.totalorder %s238_s11, %s2761_s20  ;;  %p2770_p6 = scmp.lt.s32.totalorder %s2761_s20, %s2761_s20 }
  0x2a   : > { %p2764_p9 = pnand %p2762_p7, %p2750_p12  ;;  %p2771_p4 = por %p2770_p6, %p2769_p2 }
  0x2c   : > { %p2765_p1 = pneg %p2764_p9 }
  0x2e   : > { %p2772_p8 = pnand %p2771_p4, %p2765_p1 }
  0x30   : > { %2775 = shalt.err (!%p2772_p8)
}
  0x31   : > { %s2971_s10 = smov 384   ;;  %s2972_s13 = smov 24  }
  0x32   : > { %2482 = dma.hbm_to_vmem [thread:$0]  (!%p3086_p10), %s3890_s3, 12288, %s238_s11, [#allocation6], %s2971_s10, %s2971_s10, %s2972_s13  }
  0x33   : > { %s36_s16 = sadd.s32 1, %s2960_s26  ;;  %s39_s17 = sadd.s32 1, %s2964_s27 }
  0x34   : > { %p37_p1 = scmp.ge.s32.totalorder %s36_s16, 2  ;;  %s48_s18 = sadd.s32 1, %s2948_s23 }
  0x35   : > { %p55_p2 = scmp.ne.s32.totalorder %s2948_s23, %s2944_s22  ;;  %p56_p4 = scmp.eq.s32.totalorder %s2968_s28, 0 }
  0x36   : > { %s3916_s16 = smov (%p37_p1, %s36_s16), 0  ;;  %s3918_s17 = smov (!%p37_p1, %s39_s17), %s2964_s27 }
  0x37   : > { %3891 = sst [smem:[#allocation18_spill]] %s3916_s16  ;;  %s44_s19 = ssub.s32 %s2960_s26, %s3916_s16 }
  0x38   : > { %p41_p6 = scmp.ge.s32.totalorder %s3918_s17, 2  ;;  %p3892_p8 = scmp.eq.s32.totalorder %s3057_s29, 3 }
  0x39   : > { %p3123_p10 = por %p56_p4, %p55_p2  ;;  %p2498_p12 = scmp.lt.s32.totalorder %s2968_s28, 4 }
  0x3a   : > { %p3119_p11 = por %p3892_p8, %p55_p2  ;;  %s3920_s17 = smov (%p41_p6, %s3918_s17), 0 }
  0x3b   : > { %3895 = sst [smem:[#allocation19_spill]] %s3920_s17  ;;  %s251_s20 = sand.u32 1, %s2948_s23  }
  0x3c   : > { %s2383_s10 = sshll.u32 %s2960_s26, 5  ;;  %s43_s13 = ssub.s32 %s2964_s27, %s3920_s17 }
  0x3d   : > { %s45_s14 = sor.u32 %s44_s19, %s43_s13  ;;  %s2211_s15 = sshll.u32 %s251_s20, 8 }
  0x3e   : > { %p46_p13 = scmp.eq.s32.totalorder %s45_s14, 0  ;;  %s2214_s30 = sshll.u32 %s2964_s27, 6 }
  0x3f   : > { %s255_s3 = scalar_lea.vmem [#allocation2], %s2211_s15  ;;  %s262_s21 = sadd.s32 %s2383_s10, %s2214_s30 }
  0x40   : > { %s265_s16 = sshll.u32 %s255_s3, 4  ;;  %s2215_s6 = sshll.u32 %s262_s21, 7  ;;  %s3138_s16 = int_to_ptr.vmem [resolvable:$true] %s265_s16 }
  0x41   : > { %s3136_s8 = scalar_select %p46_p13, %s2948_s23, %s48_s18  }
  0x42   : > { %p3144_p0 = pnand %p2498_p12, %p3123_p10  ;;  %s3151_s19 = scalar_lea.hbm %s3862_s0, %s2215_s6 }
  0x43   : > { %s3153_s3 = scalar_lea.sflag [#allocation3], %s251_s20  ;;  %s2776_s21 = scalar_lea.hbm %s3151_s19, 4096 }
  0x44   : > { %p2777_p3 = scmp.ne.s32.totalorder %s3151_s19, %s2776_s21  ;;  %p2778_p5 = pneg %p3144_p0 }
  0x45   : > { %s2781_s17 = scalar_lea.hbm %s3862_s0, 16384  ;;  %p2782_p1 = scmp.lt.u32.totalorder %s3151_s19, %s3862_s0 }
  0x46   : > { %p2779_p7 = pnand %p2778_p5, %p2777_p3  ;;  %p2783_p2 = scmp.lt.u32.totalorder %s2781_s17, %s2776_s21 }
  0x47   : > { %p2785_p6 = scmp.lt.u32.totalorder %s2776_s21, %s3151_s19 }
  0x48   : > { %p2780_p9 = pneg %p2779_p7  ;;  %p2784_p4 = por %p2783_p2, %p2782_p1 }
  0x4a   : > { %p2786_p8 = por %p2785_p6, %p2784_p4 }
  0x4c   : > { %p2787_p10 = pnand %p2786_p8, %p2780_p9 }
  0x4e   : > { %2790 = shalt.err (!%p2787_p10)
}
  0x4f   : > { %s2791_s11 = scalar_lea.vmem %s3138_s16, 4096  ;;  %s2973_s20 = smov [#allocation2]  }
  0x50   : > { %p2792_p12 = scmp.ne.s32.totalorder %s3138_s16, %s2791_s11  ;;  %s2796_s10 = sshll.u32 %s2973_s20, 4  ;;  %s2797_s10 = int_to_ptr.vmem [resolvable:$false] %s2796_s10 }
  0x51   : > { %s2798_s13 = scalar_lea.vmem %s2797_s10, 8192  ;;  %p2799_p7 = scmp.lt.s32.totalorder %s3138_s16, %s2797_s10 }
  0x52   : > { %p2794_p13 = pnand %p2792_p12, %p2778_p5  ;;  %p2800_p1 = scmp.lt.s32.totalorder %s2798_s13, %s2791_s11 }
  0x54   : > { %p2795_p3 = pneg %p2794_p13  ;;  %p2801_p2 = por %p2800_p1, %p2799_p7 }
  0x56   : > { %p2802_p4 = pnand %p2801_p2, %p2795_p3 }
  0x58   : > { %2805 = shalt.err (!%p2802_p4)
}
  0x59   : > { %s2974_s14 = smov 256   ;;  %s2975_s15 = smov 16  }
  0x5a   : > { %2486 = dma.hbm_to_vmem [thread:$0]  (!%p3144_p0), %s3151_s19, 4096, %s3138_s16, %s3153_s3, %s2974_s14, %s2974_s14, %s2975_s15  }
  0x5b   : > { %p3897_p5 = scmp.ne.s32.totalorder %s3888_s9, 0 }
  0x5c   : > { %s3184_s21 = sand.u32 (!%p3897_p5), 1, %s2944_s22   ;;  %p3898_p9 = scmp.ne.s32.totalorder (!%p3897_p5), %s3885_s7, 0 }
  0x5d   : > { %277 = sbr.rel (%p3897_p5) target bundleno = 768 (0x300), region = 36  ;;  %s2217_s30 = sshll.u32 (!%p3897_p5), %s3184_s21, 8 }
  0x5e   : > { %s280_s26 = scalar_lea.sflag (!%p3897_p5), [#allocation3], %s3184_s21  ;;  %s3188_s17 = scalar_lea.vmem (!%p3897_p5), [#allocation2], %s2217_s30 }
  0x64   : > { %2923 = dma.done.wait (%p3898_p9), %s280_s26, 4096  }
  0x65   : > { %2925 = vsyncadd (%p3898_p9), %s280_s26, 4294963200  ;;  %p3899_p0 = scmp.eq.s32.totalorder %s3057_s29, 0 }
  0x67   : > { %2927 = dma.done.wait (%p3899_p0), [#allocation6], 12288   ;;  %p3900_p6 = pmov %p3899_p0 }
  0x68   : > { %v3199_v0 = vld [vmem:[%s3188_s17] sm:$0xff]  ;;  %v3202_v1 = vld [vmem:[%s3188_s17 + $0x8] sm:$0xff]  ;;  %v3213_v5 = vld [vmem:[%s3188_s17 + $0x10] sm:$0xff]  ;;  %s3662_s19 = sshll.u32 %s3184_s21, 7  ;;  %s2432_s18 = sshll.u32 %s2952_s24, 5 }
  0x69   : > { %2929 = vsyncadd (%p3900_p6), [#allocation6], 4294955008  ;;  %v3205_v2 = vld [vmem:[%s3188_s17 + $0x20] sm:$0xff]  ;;  %v364_v3 = vadd.f32 %v3202_v1, %v3199_v0  ;;  %v3210_v4 = vld [vmem:[%s3188_s17 + $0x28] sm:$0xff]  ;;  %s3665_s3 = scalar_lea.vmem [#allocation7], %s3662_s19  ;;  %s3669_s6 = scalar_lea.vmem [#allocation8], %s3662_s19 }
  0x6a   : > { %v3216_v6 = vld [vmem:[%s3188_s17 + $0x18] sm:$0xff]  ;;  %v370_v7 = vadd.f32 %v3210_v4, %v3205_v2  ;;  %v3221_v8 = vld [vmem:[%s3188_s17 + $0x30] sm:$0xff]  ;;  %v3231_v12 = vld [vmem:[%s3188_s17 + $0x40] sm:$0xff]  ;;  %s2371_s11 = sshll.u32 %s2956_s25, 6  ;;  %s1979_s10 = sand.u32 1, %s3057_s29  }
  0x6b   : > { %v3224_v9 = vld [vmem:[%s3188_s17 + $0x38] sm:$0xff]  ;;  %365 = vadd.xlane.f32.xlu0 %v364_v3  ;;  %v367_v10 = vadd.f32 %v3216_v6, %v3213_v5  ;;  %v3234_v13 = vld [vmem:[%s3188_s17 + $0x48] sm:$0xff]  ;;  %v3237_v14 = vld [vmem:[%s3188_s17 + $0x50] sm:$0xff]  ;;  %s1998_s20 = sadd.s32 %s2432_s18, %s2371_s11  ;;  %s2020_s24 = sshll.u32 %s3669_s6, 4  ;;  %s3713_s24 = int_to_ptr.vmem [resolvable:$true] %s2020_s24 }
  0x6c   : > { %371 = vadd.xlane.f32.xlu1 %v370_v7  ;;  %v373_v11 = vadd.f32 %v3224_v9, %v3221_v8  ;;  %v3240_v15 = vld [vmem:[%s3188_s17 + $0x58] sm:$0xff]  ;;  %v376_v16 = vadd.f32 %v3234_v13, %v3231_v12  ;;  %v3247_v18 = vld [vmem:[%s3188_s17 + $0x60] sm:$0xff]  ;;  %v3250_v19 = vld [vmem:[%s3188_s17 + $0x68] sm:$0xff]  ;;  %s3701_s13 = sshll.u32 %s1998_s20, 6  ;;  %s2001_s25 = sshll.u32 %s3665_s3, 4  ;;  %s3721_s25 = int_to_ptr.vmem [resolvable:$true] %s2001_s25 }
  0x6d   : > { %v379_v17 = vadd.f32 %v3240_v15, %v3237_v14  ;;  %v3253_v20 = vld [vmem:[%s3188_s17 + $0x70] sm:$0xff]  ;;  %v3256_v21 = vld [vmem:[%s3188_s17 + $0x78] sm:$0xff]  ;;  %v3259_v22 = vld [vmem:[%s3188_s17 + $0x80] sm:$0xff]  ;;  %v382_v24 = vadd.f32 %v3250_v19, %v3247_v18  ;;  %s3709_s15 = scalar_lea.hbm %s3867_s5, %s3701_s13  ;;  %s3725_s7 = scalar_lea.sflag [#allocation9], %s1979_s10 }
  0x6e   : > { %v3262_v23 = vld [vmem:[%s3188_s17 + $0x88] sm:$0xff]  ;;  %v3267_v25 = vld [vmem:[%s3188_s17 + $0x90] sm:$0xff]  ;;  %v3270_v26 = vld [vmem:[%s3188_s17 + $0x98] sm:$0xff]  ;;  %v385_v27 = vadd.f32 %v3256_v21, %v3253_v20  ;;  %s2806_s9 = scalar_lea.vmem %s3713_s24, 2048  ;;  %s2976_s16 = smov [#allocation8]  }
  0x6f   : > { %368 = vadd.xlane.f32.xlu0 %v367_v10  ;;  %v3275_v28 = vld [vmem:[%s3188_s17 + $0xa0] sm:$0xff]  ;;  %v3278_v29 = vld [vmem:[%s3188_s17 + $0xa8] sm:$0xff]  ;;  %v388_v30 = vadd.f32 %v3262_v23, %v3259_v22  ;;  %v3283_v31 = vld [vmem:[%s3188_s17 + $0xb0] sm:$0xff]  ;;  %v391_v33 = vadd.f32 %v3270_v26, %v3267_v25  ;;  %p2807_p8 = scmp.ne.s32.totalorder %s3713_s24, %s2806_s9  ;;  %s2810_s18 = sshll.u32 %s2976_s16, 4  ;;  %s2811_s18 = int_to_ptr.vmem [resolvable:$false] %s2810_s18 }
  0x70   : > { %374 = vadd.xlane.f32.xlu1 %v373_v11  ;;  %v3286_v32 = vld [vmem:[%s3188_s17 + $0xb8] sm:$0xff]  ;;  %v3291_v34 = vld [vmem:[%s3188_s17 + $0xc0] sm:$0xff]  ;;  %v3294_v35 = vld [vmem:[%s3188_s17 + $0xc8] sm:$0xff]  ;;  %v394_v36 = vadd.f32 %v3278_v29, %v3275_v28  ;;  %s2812_s11 = scalar_lea.vmem %s2811_s18, 4096  ;;  %p2813_p13 = scmp.lt.s32.totalorder %s3713_s24, %s2811_s18 }
  0x71   : > { %v3299_v37 = vld [vmem:[%s3188_s17 + $0xd0] sm:$0xff]  ;;  %v3302_v38 = vld [vmem:[%s3188_s17 + $0xd8] sm:$0xff]  ;;  %v397_v39 = vadd.f32 %v3286_v32, %v3283_v31  ;;  %v3307_v40 = vld [vmem:[%s3188_s17 + $0xe0] sm:$0xff]  ;;  %v400_v42 = vadd.f32 %v3294_v35, %v3291_v34  ;;  %p2808_p10 = pnand %p2807_p8, %p3119_p11  ;;  %p2814_p3 = scmp.lt.s32.totalorder %s2812_s11, %s2806_s9 }
  0x72   : > { %v3310_v41 = vld [vmem:[%s3188_s17 + $0xe8] sm:$0xff]  ;;  %v3315_v43 = vld [vmem:[%s3188_s17 + $0xf0] sm:$0xff]  ;;  %v3318_v44 = vld [vmem:[%s3188_s17 + $0xf8] sm:$0xff]  ;;  %v403_v45 = vadd.f32 %v3302_v38, %v3299_v37  ;;  %s3901_s17 = sld [smem:[#allocation21_spill]] }
  0x73   : > { %377 = vadd.xlane.f32.xlu0 %v376_v16  ;;  %v406_v46 = vadd.f32 %v3310_v41, %v3307_v40  ;;  %v409_v47 = vadd.f32 %v3318_v44, %v3315_v43  ;;  %v2572_v48 = vld [vmem:[#allocation5 + $0x4] ss:$24 sps:$4 sm:$0xff]   ;;  %v2576_v50 = vld [vmem:[#allocation5] ss:$24 sps:$4 sm:$0xff]   ;;  %v2578_v52 = vld [vmem:[#allocation5 + $0x34] ss:$24 sps:$4 sm:$0xff]   ;;  %p2809_p12 = pneg %p2808_p10  ;;  %p2815_p7 = por %p2814_p3, %p2813_p13 }
  0x74   : > { %380 = vadd.xlane.f32.xlu1 %v379_v17  ;;  %v2574_v49 = vld [vmem:[#allocation5 + $0xc] ss:$24 sps:$4 sm:$0xff]   ;;  %v2577_v51 = vld [vmem:[#allocation5 + $0x8] ss:$24 sps:$4 sm:$0xff]   ;;  %v2580_v53 = vld [vmem:[#allocation5 + $0x3c] ss:$24 sps:$4 sm:$0xff]   ;;  %1299 = vmatprep.subr.bf16.mxu0 %v2572_v48 }
  0x75   : > { %1412 = vmatprep.subr.bf16.mxu1 %v2574_v49  ;;  %1300 = vmatpush1.bf16.msra.mxu0 %v2576_v50  ;;  %v2582_v54 = vld [vmem:[#allocation5 + $0x30] ss:$24 sps:$4 sm:$0xff]   ;;  %v2584_v56 = vld [vmem:[#allocation5 + $0x64] ss:$24 sps:$4 sm:$0xff]   ;;  %v2588_v58 = vld [vmem:[#allocation5 + $0x60] ss:$24 sps:$4 sm:$0xff]   ;;  %p2816_p1 = pnand %p2815_p7, %p2809_p12 }
  0x76   : > { %1413 = vmatpush1.bf16.msra.mxu1 %v2577_v51  ;;  %v2583_v55 = vld [vmem:[#allocation5 + $0x38] ss:$24 sps:$4 sm:$0xff]   ;;  %1301 = vmatprep.subr.bf16.mxu0 %v2578_v52  ;;  %v2586_v57 = vld [vmem:[#allocation5 + $0x6c] ss:$24 sps:$4 sm:$0xff]   ;;  %v2589_v59 = vld [vmem:[#allocation5 + $0x68] ss:$24 sps:$4 sm:$0xff]  }
  0x77   : > { %383 = vadd.xlane.f32.xlu0 %v382_v24  ;;  %1414 = vmatprep.subr.bf16.mxu1 %v2580_v53  ;;  %v2590_v60 = vld [vmem:[#allocation5 + $0x94] ss:$24 sps:$4 sm:$0xff]   ;;  %v2594_v62 = vld [vmem:[#allocation5 + $0x90] ss:$24 sps:$4 sm:$0xff]   ;;  %v2596_v3 = vld [vmem:[#allocation5 + $0xc4] ss:$24 sps:$4 sm:$0xff]  }
  0x78   : > { %386 = vadd.xlane.f32.xlu1 %v385_v27  ;;  %v2592_v61 = vld [vmem:[#allocation5 + $0x9c] ss:$24 sps:$4 sm:$0xff]   ;;  %v2595_v63 = vld [vmem:[#allocation5 + $0x98] ss:$24 sps:$4 sm:$0xff]   ;;  %v2598_v7 = vld [vmem:[#allocation5 + $0xcc] ss:$24 sps:$4 sm:$0xff]   ;;  %s3719_s4 = scalar_lea.hbm %s3901_s17, %s3701_s13 }
  0x79   : > { %1302 = vmatpush1.bf16.msra.mxu0 %v2582_v54  ;;  %v2600_v10 = vld [vmem:[#allocation5 + $0xc0] ss:$24 sps:$4 sm:$0xff]   ;;  %v2602_v16 = vld [vmem:[#allocation5 + $0xf4] ss:$24 sps:$4 sm:$0xff]   ;;  %v2606_v24 = vld [vmem:[#allocation5 + $0xf0] ss:$24 sps:$4 sm:$0xff]  }
  0x7a   : > { %1415 = vmatpush1.bf16.msra.mxu1 %v2583_v55  ;;  %1303 = vmatprep.subr.bf16.mxu0 %v2584_v56  ;;  %v2601_v11 = vld [vmem:[#allocation5 + $0xc8] ss:$24 sps:$4 sm:$0xff]   ;;  %v2604_v17 = vld [vmem:[#allocation5 + $0xfc] ss:$24 sps:$4 sm:$0xff]   ;;  %v2607_v27 = vld [vmem:[#allocation5 + $0xf8] ss:$24 sps:$4 sm:$0xff]  }
  0x7b   : > { %389 = vadd.xlane.f32.xlu0 %v388_v30  ;;  %1416 = vmatprep.subr.bf16.mxu1 %v2586_v57  ;;  %v2608_v30 = vld [vmem:[#allocation5 + $0x124] ss:$24 sps:$4 sm:$0xff]   ;;  %v2624_v50 = vld [vmem:[#allocation5 + $0x180] ss:$24 sps:$4 sm:$0xff]   ;;  %v2626_v52 = vld [vmem:[#allocation5 + $0x1b4] ss:$24 sps:$4 sm:$0xff]  }
  0x7c   : > { %392 = vadd.xlane.f32.xlu1 %v391_v33  ;;  %v2610_v33 = vld [vmem:[#allocation5 + $0x12c] ss:$24 sps:$4 sm:$0xff]   ;;  %v2625_v51 = vld [vmem:[#allocation5 + $0x188] ss:$24 sps:$4 sm:$0xff]   ;;  %v2628_v53 = vld [vmem:[#allocation5 + $0x1bc] ss:$24 sps:$4 sm:$0xff]  }
  0x7d   : > { %1304 = vmatpush1.bf16.msra.mxu0 %v2588_v58  ;;  %v2620_v48 = vld [vmem:[#allocation5 + $0x184] ss:$24 sps:$4 sm:$0xff]  }
  0x7e   : > { %1417 = vmatpush1.bf16.msra.mxu1 %v2589_v59  ;;  %1305 = vmatprep.subr.bf16.mxu0 %v2590_v60  ;;  %v2622_v49 = vld [vmem:[#allocation5 + $0x18c] ss:$24 sps:$4 sm:$0xff]  }
  0x7f   : > { %395 = vadd.xlane.f32.xlu0 %v394_v36  ;;  %1418 = vmatprep.subr.bf16.mxu1 %v2592_v61  ;;  %v2612_v36 = vld [vmem:[#allocation5 + $0x120] ss:$24 sps:$4 sm:$0xff]  }
  0x80   : > { %398 = vadd.xlane.f32.xlu1 %v397_v39  ;;  %v2613_v39 = vld [vmem:[#allocation5 + $0x128] ss:$24 sps:$4 sm:$0xff]  }
  0x81   : > { %1306 = vmatpush1.bf16.msra.mxu0 %v2594_v62 }
  0x82   : > { %1419 = vmatpush1.bf16.msra.mxu1 %v2595_v63  ;;  %1307 = vmatprep.subr.bf16.mxu0 %v2596_v3 }
  0x83   : > { %401 = vadd.xlane.f32.xlu0 %v400_v42  ;;  %1420 = vmatprep.subr.bf16.mxu1 %v2598_v7  ;;  %v2614_v42 = vld [vmem:[#allocation5 + $0x154] ss:$24 sps:$4 sm:$0xff]  }
  0x84   : > { %404 = vadd.xlane.f32.xlu1 %v403_v45  ;;  %v2616_v45 = vld [vmem:[#allocation5 + $0x15c] ss:$24 sps:$4 sm:$0xff]  }
  0x85   : > { %1308 = vmatpush1.bf16.msra.mxu0 %v2600_v10 }
  0x86   : > { %1421 = vmatpush1.bf16.msra.mxu1 %v2601_v11  ;;  %1309 = vmatprep.subr.bf16.mxu0 %v2602_v16 }
  0x87   : > { %407 = vadd.xlane.f32.xlu0 %v406_v46  ;;  %1422 = vmatprep.subr.bf16.mxu1 %v2604_v17  ;;  %v2618_v46 = vld [vmem:[#allocation5 + $0x150] ss:$24 sps:$4 sm:$0xff]  }
  0x88   : > { %410 = vadd.xlane.f32.xlu1 %v409_v47  ;;  %v2619_v47 = vld [vmem:[#allocation5 + $0x158] ss:$24 sps:$4 sm:$0xff]  }
  0x89   : > { %1310 = vmatpush1.bf16.msra.mxu0 %v2606_v24 }
  0x8a   : > { %1423 = vmatpush1.bf16.msra.mxu1 %v2607_v27  ;;  %1311 = vmatprep.subr.bf16.mxu0 %v2608_v30 }
  0x8b   : > { %1424 = vmatprep.subr.bf16.mxu1 %v2610_v33 }
  0x8d   : > { %1312 = vmatpush1.bf16.msra.mxu0 %v2612_v36 }
  0x8e   : > { %1425 = vmatpush1.bf16.msra.mxu1 %v2613_v39  ;;  %1313 = vmatprep.subr.bf16.mxu0 %v2614_v42 }
  0x8f   : > { %1426 = vmatprep.subr.bf16.mxu1 %v2616_v45 }
  0x91   : > { %1314 = vmatpush1.bf16.msra.mxu0 %v2618_v46 }
  0x92   : > { %1427 = vmatpush1.bf16.msra.mxu1 %v2619_v47  ;;  %1315 = vmatprep.subr.bf16.mxu0 %v2620_v48 }
  0x93   : > { %1428 = vmatprep.subr.bf16.mxu1 %v2622_v49 }
  0x95   : > { %1316 = vmatpush1.bf16.msra.mxu0 %v2624_v50 }
  0x96   : > { %1429 = vmatpush1.bf16.msra.mxu1 %v2625_v51  ;;  %1317 = vmatprep.subr.bf16.mxu0 %v2626_v52 }
  0x97   : > { %1430 = vmatprep.subr.bf16.mxu1 %v2628_v53 }
  0xf8   : > { %v366_v54 = vpop.xlane.xlu0 %365 }
  0xf9   : > { %v413_v55 = vmul.f32 0.00390625, %v366_v54  ;;  %v372_v56 = vpop.xlane.xlu1 %371 }
  0xfa   : > { %v415_v57 = vmul.f32 0.00390625, %v372_v56 }
  0xfb   : > { %v3327_v58 = vsub.f32 %v3199_v0, %v413_v55  ;;  %v3330_v59 = vsub.f32 %v3202_v1, %v413_v55 }
  0xfc   : > { %v3333_v60 = vsub.f32 %v3205_v2, %v415_v57  ;;  %v3336_v61 = vsub.f32 %v3210_v4, %v415_v57  ;;  %v369_v62 = vpop.xlane.xlu0 %368 }
  0xfd   : > { %v414_v63 = vmul.f32 0.00390625, %v369_v62  ;;  %v375_v3 = vpop.xlane.xlu1 %374  ;;  %v461_v7 = vmul.f32 %v3327_v58, %v3327_v58  ;;  %v462_v10 = vmul.f32 %v3330_v59, %v3330_v59 }
  0xfe   : > { %v416_v0 = vmul.f32 0.00390625, %v375_v3  ;;  %v465_v1 = vmul.f32 %v3333_v60, %v3333_v60  ;;  %v466_v2 = vmul.f32 %v3336_v61, %v3336_v61 }
  0xff   : > { %v3347_v11 = vsub.f32 %v3213_v5, %v414_v63  ;;  %v3350_v4 = vsub.f32 %v3216_v6, %v414_v63  ;;  %v493_v16 = vadd.f32 %v462_v10, %v461_v7 }
 0x100   : > { %v3353_v17 = vsub.f32 %v3221_v8, %v416_v0  ;;  %v3356_v24 = vsub.f32 %v3224_v9, %v416_v0  ;;  %v378_v27 = vpop.xlane.xlu0 %377  ;;  %v499_v36 = vadd.f32 %v466_v2, %v465_v1 }
 0x101   : > { %v417_v30 = vmul.f32 0.00390625, %v378_v27  ;;  %494 = vadd.xlane.f32.xlu0 %v493_v16  ;;  %v381_v33 = vpop.xlane.xlu1 %380  ;;  %v463_v39 = vmul.f32 %v3347_v11, %v3347_v11  ;;  %v464_v5 = vmul.f32 %v3350_v4, %v3350_v4 }
 0x102   : > { %v418_v6 = vmul.f32 0.00390625, %v381_v33  ;;  %v467_v42 = vmul.f32 %v3353_v17, %v3353_v17  ;;  %v468_v8 = vmul.f32 %v3356_v24, %v3356_v24 }
 0x103   : > { %v3367_v9 = vsub.f32 %v3231_v12, %v417_v30  ;;  %v3370_v45 = vsub.f32 %v3234_v13, %v417_v30  ;;  %v496_v46 = vadd.f32 %v464_v5, %v463_v39 }
 0x104   : > { %v3373_v47 = vsub.f32 %v3237_v14, %v418_v6  ;;  %v3376_v48 = vsub.f32 %v3240_v15, %v418_v6  ;;  %v384_v49 = vpop.xlane.xlu0 %383  ;;  %v502_v52 = vadd.f32 %v468_v8, %v467_v42  ;;  %v2630_v42 = vld [vmem:[#allocation5 + $0x1b0] ss:$24 sps:$4 sm:$0xff]  }
 0x105   : > { %v419_v50 = vmul.f32 0.00390625, %v384_v49  ;;  %500 = vadd.xlane.f32.xlu0 %v499_v36  ;;  %497 = vadd.xlane.f32.xlu1 %v496_v46  ;;  %v387_v51 = vpop.xlane.xlu1 %386  ;;  %v469_v12 = vmul.f32 %v3367_v9, %v3367_v9  ;;  %v470_v13 = vmul.f32 %v3370_v45, %v3370_v45  ;;  %v2631_v8 = vld [vmem:[#allocation5 + $0x1b8] ss:$24 sps:$4 sm:$0xff]  }
 0x106   : > { %v420_v53 = vmul.f32 0.00390625, %v387_v51  ;;  %v471_v14 = vmul.f32 %v3373_v47, %v3373_v47  ;;  %v472_v15 = vmul.f32 %v3376_v48, %v3376_v48  ;;  %1318 = vmatpush1.bf16.msra.mxu0 %v2630_v42  ;;  %1431 = vmatpush1.bf16.msra.mxu1 %v2631_v8  ;;  %v2643_v42 = vld [vmem:[#allocation5 + $0x218] ss:$24 sps:$4 sm:$0xff]  }
 0x107   : > { %v3387_v54 = vsub.f32 %v3247_v18, %v419_v50  ;;  %v3390_v55 = vsub.f32 %v3250_v19, %v419_v50  ;;  %v505_v56 = vadd.f32 %v470_v13, %v469_v12 }
 0x108   : > { %v3393_v57 = vsub.f32 %v3253_v20, %v420_v53  ;;  %v3396_v62 = vsub.f32 %v3256_v21, %v420_v53  ;;  %v390_v63 = vpop.xlane.xlu0 %389  ;;  %v508_v10 = vadd.f32 %v472_v15, %v471_v14  ;;  %v2632_v15 = vld [vmem:[#allocation5 + $0x1e4] ss:$24 sps:$4 sm:$0xff]  }
 0x109   : > { %v421_v3 = vmul.f32 0.00390625, %v390_v63  ;;  %503 = vadd.xlane.f32.xlu1 %v502_v52  ;;  %506 = vadd.xlane.f32.xlu0 %v505_v56  ;;  %v393_v7 = vpop.xlane.xlu1 %392  ;;  %v473_v18 = vmul.f32 %v3387_v54, %v3387_v54  ;;  %v474_v19 = vmul.f32 %v3390_v55, %v3390_v55 }
 0x10a   : > { %v422_v0 = vmul.f32 0.00390625, %v393_v7  ;;  %v475_v20 = vmul.f32 %v3393_v57, %v3393_v57  ;;  %v476_v21 = vmul.f32 %v3396_v62, %v3396_v62  ;;  %1319 = vmatprep.subr.bf16.mxu0 %v2632_v15 }
 0x10b   : > { %v3407_v1 = vsub.f32 %v3259_v22, %v421_v3  ;;  %v3410_v2 = vsub.f32 %v3262_v23, %v421_v3  ;;  %v511_v16 = vadd.f32 %v474_v19, %v473_v18  ;;  %v2636_v18 = vld [vmem:[#allocation5 + $0x1e0] ss:$24 sps:$4 sm:$0xff]  }
 0x10c   : > { %v3413_v27 = vsub.f32 %v3267_v25, %v422_v0  ;;  %v3416_v30 = vsub.f32 %v3270_v26, %v422_v0  ;;  %v396_v33 = vpop.xlane.xlu0 %395  ;;  %v514_v5 = vadd.f32 %v476_v21, %v475_v20  ;;  %v2637_v19 = vld [vmem:[#allocation5 + $0x1e8] ss:$24 sps:$4 sm:$0xff]   ;;  %1320 = vmatpush1.bf16.msra.mxu0 %v2636_v18  ;;  %v2658_v18 = vld [vmem:[#allocation5 + $0x2ac] ss:$24 sps:$4 sm:$0xff]  }
 0x10d   : > { %v423_v36 = vmul.f32 0.00390625, %v396_v33  ;;  %509 = vadd.xlane.f32.xlu1 %v508_v10  ;;  %512 = vadd.xlane.f32.xlu0 %v511_v16  ;;  %v399_v39 = vpop.xlane.xlu1 %398  ;;  %v477_v22 = vmul.f32 %v3407_v1, %v3407_v1  ;;  %v478_v23 = vmul.f32 %v3410_v2, %v3410_v2 }
 0x10e   : > { %v424_v6 = vmul.f32 0.00390625, %v399_v39  ;;  %v479_v25 = vmul.f32 %v3413_v27, %v3413_v27  ;;  %v480_v26 = vmul.f32 %v3416_v30, %v3416_v30 }
 0x10f   : > { %v3427_v46 = vsub.f32 %v3275_v28, %v423_v36  ;;  %v3430_v49 = vsub.f32 %v3278_v29, %v423_v36  ;;  %v517_v50 = vadd.f32 %v478_v23, %v477_v22  ;;  %v2640_v22 = vld [vmem:[#allocation5 + $0x21c] ss:$24 sps:$4 sm:$0xff]  }
 0x110   : > { %v3433_v51 = vsub.f32 %v3283_v31, %v424_v6  ;;  %v3436_v52 = vsub.f32 %v3286_v32, %v424_v6  ;;  %v402_v12 = vpop.xlane.xlu0 %401  ;;  %v520_v14 = vadd.f32 %v480_v26, %v479_v25  ;;  %v2634_v31 = vld [vmem:[#allocation5 + $0x1ec] ss:$24 sps:$4 sm:$0xff]   ;;  %v2642_v26 = vld [vmem:[#allocation5 + $0x210] ss:$24 sps:$4 sm:$0xff]  }
 0x111   : > { %v425_v13 = vmul.f32 0.00390625, %v402_v12  ;;  %515 = vadd.xlane.f32.xlu1 %v514_v5  ;;  %518 = vadd.xlane.f32.xlu0 %v517_v50  ;;  %v405_v53 = vpop.xlane.xlu1 %404  ;;  %v481_v28 = vmul.f32 %v3427_v46, %v3427_v46  ;;  %v482_v29 = vmul.f32 %v3430_v49, %v3430_v49  ;;  %v2638_v5 = vld [vmem:[#allocation5 + $0x214] ss:$24 sps:$4 sm:$0xff]  }
 0x112   : > { %v426_v56 = vmul.f32 0.00390625, %v405_v53  ;;  %v483_v32 = vmul.f32 %v3433_v51, %v3433_v51  ;;  %v484_v63 = vmul.f32 %v3436_v52, %v3436_v52  ;;  %1432 = vmatprep.subr.bf16.mxu1 %v2634_v31  ;;  %1321 = vmatprep.subr.bf16.mxu0 %v2638_v5  ;;  %v2646_v53 = vld [vmem:[#allocation5 + $0x24c] ss:$24 sps:$4 sm:$0xff]  }
 0x113   : > { %v3447_v3 = vsub.f32 %v3291_v34, %v425_v13  ;;  %v3450_v7 = vsub.f32 %v3294_v35, %v425_v13  ;;  %v523_v10 = vadd.f32 %v482_v29, %v481_v28  ;;  %1433 = vmatpush1.bf16.msra.mxu1 %v2637_v19  ;;  %1322 = vmatpush1.bf16.msra.mxu0 %v2642_v26  ;;  %v2648_v28 = vld [vmem:[#allocation5 + $0x240] ss:$24 sps:$4 sm:$0xff]   ;;  %v2650_v31 = vld [vmem:[#allocation5 + $0x274] ss:$24 sps:$4 sm:$0xff]  }
 0x114   : > { %v3453_v0 = vsub.f32 %v3299_v37, %v426_v56  ;;  %v3456_v20 = vsub.f32 %v3302_v38, %v426_v56  ;;  %v408_v21 = vpop.xlane.xlu0 %407  ;;  %v526_v33 = vadd.f32 %v484_v63, %v483_v32  ;;  %1434 = vmatprep.subr.bf16.mxu1 %v2640_v22  ;;  %v2649_v29 = vld [vmem:[#allocation5 + $0x248] ss:$24 sps:$4 sm:$0xff]   ;;  %v2652_v56 = vld [vmem:[#allocation5 + $0x27c] ss:$24 sps:$4 sm:$0xff]   ;;  %v2655_v63 = vld [vmem:[#allocation5 + $0x278] ss:$24 sps:$4 sm:$0xff]  }
 0x115   : > { %v427_v16 = vmul.f32 0.00390625, %v408_v21  ;;  %521 = vadd.xlane.f32.xlu1 %v520_v14  ;;  %524 = vadd.xlane.f32.xlu0 %v523_v10  ;;  %v411_v34 = vpop.xlane.xlu1 %410  ;;  %v485_v35 = vmul.f32 %v3447_v3, %v3447_v3  ;;  %v486_v36 = vmul.f32 %v3450_v7, %v3450_v7  ;;  %v2654_v32 = vld [vmem:[#allocation5 + $0x270] ss:$24 sps:$4 sm:$0xff]   ;;  %v2656_v10 = vld [vmem:[#allocation5 + $0x2a4] ss:$24 sps:$4 sm:$0xff]  }
 0x116   : > { %v428_v39 = vmul.f32 0.00390625, %v411_v34  ;;  %v487_v37 = vmul.f32 %v3453_v0, %v3453_v0  ;;  %v488_v38 = vmul.f32 %v3456_v20, %v3456_v20  ;;  %v2660_v19 = vld [vmem:[#allocation5 + $0x2a0] ss:$24 sps:$4 sm:$0xff]   ;;  %v2664_v34 = vld [vmem:[#allocation5 + $0x2dc] ss:$24 sps:$4 sm:$0xff]  }
 0x117   : > { %v3467_v23 = vsub.f32 %v3307_v40, %v427_v16  ;;  %v3470_v6 = vsub.f32 %v3310_v41, %v427_v16  ;;  %v529_v25 = vadd.f32 %v486_v36, %v485_v35  ;;  %1435 = vmatpush1.bf16.msra.mxu1 %v2643_v42  ;;  %v2661_v21 = vld [vmem:[#allocation5 + $0x2a8] ss:$24 sps:$4 sm:$0xff]   ;;  %v2662_v16 = vld [vmem:[#allocation5 + $0x2d4] ss:$24 sps:$4 sm:$0xff]   ;;  %v2667_v35 = vld [vmem:[#allocation5 + $0x2d8] ss:$24 sps:$4 sm:$0xff]  }
 0x118   : > { %v3473_v8 = vsub.f32 %v3315_v43, %v428_v39  ;;  %v3476_v50 = vsub.f32 %v3318_v44, %v428_v39  ;;  %v532_v12 = vadd.f32 %v488_v38, %v487_v37  ;;  %v2644_v44 = vld [vmem:[#allocation5 + $0x244] ss:$24 sps:$4 sm:$0xff]   ;;  %1436 = vmatprep.subr.bf16.mxu1 %v2646_v53  ;;  %v2670_v36 = vld [vmem:[#allocation5 + $0x14] ss:$24 sps:$4 sm:$0xff]   ;;  %v622_v38 = vlaneseq }
 0x119   : > { %527 = vadd.xlane.f32.xlu1 %v526_v33  ;;  %530 = vadd.xlane.f32.xlu0 %v529_v25  ;;  %v489_v40 = vmul.f32 %v3467_v23, %v3467_v23  ;;  %v490_v41 = vmul.f32 %v3470_v6, %v3470_v6  ;;  %v2666_v33 = vld [vmem:[#allocation5 + $0x2d0] ss:$24 sps:$4 sm:$0xff]  }
 0x11a   : > { %v491_v13 = vmul.f32 %v3473_v8, %v3473_v8  ;;  %v492_v43 = vmul.f32 %v3476_v50, %v3476_v50  ;;  %1323 = vmatprep.subr.bf16.mxu0 %v2644_v44 }
 0x11b   : > { %v535_v14 = vadd.f32 %v490_v41, %v489_v40  ;;  %1324 = vmatpush1.bf16.msra.mxu0 %v2648_v28  ;;  %1437 = vmatpush1.bf16.msra.mxu1 %v2649_v29 }
 0x11c   : > { %v538_v15 = vadd.f32 %v492_v43, %v491_v13  ;;  %1325 = vmatprep.subr.bf16.mxu0 %v2650_v31  ;;  %1438 = vmatprep.subr.bf16.mxu1 %v2652_v56  ;;  %v362_v31 = vld [vmem:[%s3863_s1] sm:$0x3] }
 0x11d   : > { %533 = vadd.xlane.f32.xlu1 %v532_v12  ;;  %536 = vadd.xlane.f32.xlu0 %v535_v14  ;;  %v623_v12 = vshrl.u32 %v622_v38, 7 }
 0x11f   : > { %1326 = vmatpush1.bf16.msra.mxu0 %v2654_v32  ;;  %1439 = vmatpush1.bf16.msra.mxu1 %v2655_v63  ;;  %v628_v14 = vsub.s32 1, %v623_v12  ;;  %v624_v28 = vsub.s32 0, %v623_v12 }
 0x120   : > { %1327 = vmatprep.subr.bf16.mxu0 %v2656_v10  ;;  %1440 = vmatprep.subr.bf16.mxu1 %v2658_v18 }
 0x121   : > { %539 = vadd.xlane.f32.xlu1 %v538_v15  ;;  %v3489_v18 = vrot.slane %v362_v31, %v628_v14 }
 0x123   : > { %1328 = vmatpush1.bf16.msra.mxu0 %v2660_v19  ;;  %1441 = vmatpush1.bf16.msra.mxu1 %v2661_v21 }
 0x124   : > { %1329 = vmatprep.subr.bf16.mxu0 %v2662_v16  ;;  %1442 = vmatprep.subr.bf16.mxu1 %v2664_v34  ;;  %v363_v16 = vld [vmem:[%s3864_s2] sm:$0x3]  ;;  %v3494_v34 = vrot.slane %v362_v31, %v624_v28 }
 0x125   : > { %v3502_v12 = vrot.slane %v363_v16, %v624_v28 }
 0x127   : > { %1330 = vmatpush1.bf16.msra.mxu0 %v2666_v33  ;;  %1443 = vmatpush1.bf16.msra.mxu1 %v2667_v35 }
 0x128   : > { %1525 = vmatprep.subr.bf16.mxu0 %v2670_v36  ;;  %2435 = vmatprep.subr.bf16.mxu1 %v2670_v36 }
 0x18e   : > { %v495_v39 = vpop.xlane.xlu0 %494 }
 0x18f   : > { %v541_v37 = vmul.f32 0.00390625, %v495_v39 }
 0x191   : > { %v557_v5 = vadd.f32 1e-05, %v541_v37 }
 0x192   : > { %v498_v22 = vpop.xlane.xlu1 %497  ;;  %v501_v25 = vpop.xlane.xlu0 %500 }
 0x193   : > { %2716 = vrsqrt.f32 %v557_v5  ;;  %v542_v26 = vmul.f32 0.00390625, %v498_v22  ;;  %v543_v42 = vmul.f32 0.00390625, %v501_v25  ;;  %v3499_v22 = vrot.slane %v363_v16, %v628_v14  ;;  %v2668_v16 = vld [vmem:[#allocation5 + $0x10] ss:$24 sps:$4 sm:$0xff]  }
 0x195   : > { %v558_v40 = vadd.f32 1e-05, %v542_v26  ;;  %v559_v41 = vadd.f32 1e-05, %v543_v42 }
 0x196   : > { %v504_v13 = vpop.xlane.xlu1 %503  ;;  %v507_v43 = vpop.xlane.xlu0 %506 }
 0x197   : > { %2718 = vrsqrt.f32 %v558_v40  ;;  %v544_v44 = vmul.f32 0.00390625, %v504_v13  ;;  %v545_v53 = vmul.f32 0.00390625, %v507_v43 }
 0x198   : > { %2720 = vrsqrt.f32 %v559_v41 }
 0x199   : > { %v560_v29 = vadd.f32 1e-05, %v544_v44  ;;  %v561_v15 = vadd.f32 1e-05, %v545_v53 }
 0x19a   : > { %v510_v56 = vpop.xlane.xlu1 %509  ;;  %v513_v32 = vpop.xlane.xlu0 %512 }
 0x19b   : > { %2722 = vrsqrt.f32 %v560_v29  ;;  %v546_v63 = vmul.f32 0.00390625, %v510_v56  ;;  %v547_v10 = vmul.f32 0.00390625, %v513_v32 }
 0x19c   : > { %2724 = vrsqrt.f32 %v561_v15 }
 0x19d   : > { %v2717_v19 = vpop.eup %2716  ;;  %v562_v21 = vadd.f32 1e-05, %v546_v63  ;;  %v563_v37 = vadd.f32 1e-05, %v547_v10 }
 0x19e   : > { %v516_v33 = vpop.xlane.xlu1 %515  ;;  %v590_v35 = vmul.f32 %v2717_v19, %v3330_v59  ;;  %v589_v36 = vmul.f32 %v2717_v19, %v3327_v58  ;;  %v519_v38 = vpop.xlane.xlu0 %518 }
 0x19f   : > { %2726 = vrsqrt.f32 %v562_v21  ;;  %v548_v39 = vmul.f32 0.00390625, %v516_v33  ;;  %v549_v13 = vmul.f32 0.00390625, %v519_v38  ;;  %v2673_v38 = vld [vmem:[#allocation5 + $0x44] ss:$24 sps:$4 sm:$0xff]  }
 0x1a0   : > { %v633_v5 = vmul.f32 %v3489_v18, %v590_v35  ;;  %v632_v42 = vmul.f32 %v3494_v34, %v589_v36 }
 0x1a1   : > { %v2719_v25 = vpop.eup %2718  ;;  %v564_v26 = vadd.f32 1e-05, %v548_v39  ;;  %v565_v19 = vadd.f32 1e-05, %v549_v13 }
 0x1a2   : > { %v2721_v40 = vpop.eup %2720  ;;  %v522_v41 = vpop.xlane.xlu1 %521  ;;  %v592_v59 = vmul.f32 %v2719_v25, %v3350_v4  ;;  %v591_v58 = vmul.f32 %v2719_v25, %v3347_v11  ;;  %v676_v14 = vadd.f32 %v3499_v22, %v633_v5  ;;  %v675_v31 = vadd.f32 %v3502_v12, %v632_v42 }
 0x1a3   : > { %2728 = vrsqrt.f32 %v564_v26  ;;  %v550_v43 = vmul.f32 0.00390625, %v522_v41  ;;  %v594_v44 = vmul.f32 %v2721_v40, %v3336_v61  ;;  %v593_v11 = vmul.f32 %v2721_v40, %v3333_v60  ;;  %v525_v60 = vpop.xlane.xlu0 %524 }
 0x1a4   : > { %2730 = vrsqrt.f32 %v563_v37  ;;  %v635_v53 = vmul.f32 %v3489_v18, %v592_v59  ;;  %v634_v29 = vmul.f32 %v3494_v34, %v591_v58  ;;  %v551_v40 = vmul.f32 0.00390625, %v525_v60  ;;  %v2671_v59 = vld [vmem:[#allocation5 + $0x40] ss:$24 sps:$4 sm:$0xff]  }
 0x1a5   : > { %v2723_v28 = vpop.eup %2722  ;;  %v566_v15 = vadd.f32 1e-05, %v550_v43  ;;  %v637_v4 = vmul.f32 %v3489_v18, %v594_v44  ;;  %v2676_v43 = vld [vmem:[#allocation5 + $0x74] ss:$24 sps:$4 sm:$0xff]   ;;  %v2677_v60 = vld [vmem:[#allocation5 + $0xa0] ss:$24 sps:$4 sm:$0xff]  }
 0x1a6   : > { %v678_v56 = vadd.f32 %v3499_v22, %v635_v53  ;;  %v677_v32 = vadd.f32 %v3502_v12, %v634_v29  ;;  %v596_v61 = vmul.f32 %v2723_v28, %v3356_v24  ;;  %v595_v63 = vmul.f32 %v2723_v28, %v3353_v17  ;;  %v2725_v10 = vpop.eup %2724  ;;  %v528_v21 = vpop.xlane.xlu1 %527 }
 0x1a7   : > { %2732 = vrsqrt.f32 %v566_v15  ;;  %v680_v37 = vadd.f32 %v3499_v22, %v637_v4  ;;  %v636_v24 = vmul.f32 %v3494_v34, %v593_v11  ;;  %v552_v5 = vmul.f32 0.00390625, %v528_v21  ;;  %v531_v28 = vpop.xlane.xlu0 %530 }
 0x1a8   : > { %v3517_v33 = vpack.c.bf16 %v678_v56, %v676_v14  ;;  %v3519_v35 = vpack.c.bf16 %v677_v32, %v675_v31  ;;  %v639_v36 = vmul.f32 %v3489_v18, %v596_v61  ;;  %v638_v17 = vmul.f32 %v3494_v34, %v595_v63  ;;  %v2674_v56 = vld [vmem:[#allocation5 + $0x70] ss:$24 sps:$4 sm:$0xff]  }
 0x1a9   : > { %v2727_v39 = vpop.eup %2726  ;;  %v598_v26 = vmul.f32 %v2725_v10, %v3370_v45  ;;  %2734 = vrsqrt.f32 %v565_v19  ;;  %v568_v53 = vadd.f32 1e-05, %v552_v5  ;;  %v679_v14 = vadd.f32 %v3502_v12, %v636_v24 }
 0x1aa   : > { %1331 = vmatprep.mubr.bf16.mxu0 %v3517_v33  ;;  %1444 = vmatprep.mubr.bf16.mxu1 %v3517_v33  ;;  %v682_v25 = vadd.f32 %v3499_v22, %v639_v36  ;;  %v600_v42 = vmul.f32 %v2727_v39, %v3376_v48  ;;  %v681_v58 = vadd.f32 %v3502_v12, %v638_v17  ;;  %v534_v15 = vpop.xlane.xlu1 %533  ;;  %v567_v11 = vadd.f32 1e-05, %v551_v40 }
 0x1ab   : > { %1332 = vmatmul.mubr.bf16.vlgmr.msra.gmra.mrb[0].mxu0 %v3519_v35  ;;  %1445 = vmatmul.mubr.bf16.vlgmr.msra.gmra.mrb[0].mxu1 %v3519_v35  ;;  %v641_v45 = vmul.f32 %v3489_v18, %v598_v26  ;;  %v599_v29 = vmul.f32 %v2727_v39, %v3373_v47  ;;  %v597_v4 = vmul.f32 %v2725_v10, %v3367_v9  ;;  %2736 = vrsqrt.f32 %v568_v53  ;;  %v2679_v9 = vld [vmem:[#allocation5 + $0xa4] ss:$24 sps:$4 sm:$0xff]  }
 0x1ac   : > { %1526 = vmatpush1.bf16.msra.mxu0 %v2668_v16  ;;  %2451 = vmatpush1.bf16.msra.mxu1 %v2668_v16  ;;  %v3532_v41 = vpack.c.bf16 %v682_v25, %v680_v37  ;;  %v643_v48 = vmul.f32 %v3489_v18, %v600_v42  ;;  %v3543_v32 = vpack.c.bf16 %v681_v58, %v679_v14  ;;  %v553_v21 = vmul.f32 0.00390625, %v531_v28  ;;  %v2682_v37 = vld [vmem:[#allocation5 + $0xd4] ss:$24 sps:$4 sm:$0xff]  }
 0x1ad   : > { %v2729_v13 = vpop.eup %2728  ;;  %1527 = vmatprep.subr.bf16.mxu0 %v2673_v38  ;;  %2436 = vmatprep.subr.bf16.mxu1 %v2673_v38  ;;  %v684_v63 = vadd.f32 %v3499_v22, %v641_v45  ;;  %v642_v47 = vmul.f32 %v3494_v34, %v599_v29  ;;  %v554_v16 = vmul.f32 0.00390625, %v534_v15  ;;  %2738 = vrsqrt.f32 %v567_v11  ;;  %v2685_v29 = vld [vmem:[#allocation5 + $0x104] ss:$24 sps:$4 sm:$0xff]   ;;  %v2683_v15 = vld [vmem:[#allocation5 + $0x100] ss:$24 sps:$4 sm:$0xff]  }
 0x1ae   : > { %v2731_v44 = vpop.eup %2730  ;;  %1341 = vmatprep.mubr.bf16.mxu0 %v3532_v41  ;;  %1454 = vmatprep.mubr.bf16.mxu1 %v3532_v41  ;;  %v686_v31 = vadd.f32 %v3499_v22, %v643_v48  ;;  %v604_v61 = vmul.f32 %v2729_v13, %v3396_v62  ;;  %v640_v62 = vmul.f32 %v3494_v34, %v597_v4  ;;  %v569_v5 = vadd.f32 1e-05, %v553_v21  ;;  %v540_v26 = vpop.xlane.xlu1 %539  ;;  %v2688_v4 = vld [vmem:[#allocation5 + $0x134] ss:$24 sps:$4 sm:$0xff]  }
 0x1af   : > { %v602_v19 = vmul.f32 %v2731_v44, %v3390_v55  ;;  %v685_v38 = vadd.f32 %v3502_v12, %v642_v47  ;;  %v603_v17 = vmul.f32 %v2729_v13, %v3393_v57  ;;  %v570_v25 = vadd.f32 1e-05, %v554_v16  ;;  %v537_v48 = vpop.xlane.xlu0 %536 }
 0x1b0   : > { %1528 = vmatpush1.bf16.msra.mxu0 %v2671_v59  ;;  %2452 = vmatpush1.bf16.msra.mxu1 %v2671_v59  ;;  %v3551_v36 = vpack.c.bf16 %v686_v31, %v684_v63  ;;  %v647_v39 = vmul.f32 %v3489_v18, %v604_v61  ;;  %v683_v42 = vadd.f32 %v3502_v12, %v640_v62  ;;  %v556_v14 = vmul.f32 0.00390625, %v540_v26  ;;  %v2686_v62 = vld [vmem:[#allocation5 + $0x130] ss:$24 sps:$4 sm:$0xff]  }
 0x1b1   : > { %1529 = vmatprep.subr.bf16.mxu0 %v2676_v43  ;;  %2437 = vmatprep.subr.bf16.mxu1 %v2676_v43  ;;  %v2733_v10 = vpop.eup %2732  ;;  %v645_v24 = vmul.f32 %v3489_v18, %v602_v19  ;;  %v601_v59 = vmul.f32 %v2731_v44, %v3387_v54  ;;  %v2680_v43 = vld [vmem:[#allocation5 + $0xd0] ss:$24 sps:$4 sm:$0xff]   ;;  %v646_v53 = vmul.f32 %v3494_v34, %v603_v17  ;;  %2740 = vrsqrt.f32 %v570_v25 }
 0x1b2   : > { %v690_v40 = vadd.f32 %v3499_v22, %v647_v39  ;;  %v608_v58 = vmul.f32 %v2733_v10, %v3416_v30  ;;  %v3565_v57 = vpack.c.bf16 %v685_v38, %v683_v42  ;;  %2742 = vrsqrt.f32 %v569_v5 }
 0x1b3   : > { %1342 = vmatmul.mubr.bf16.gmra.mrb[4].mxu0 %v3543_v32  ;;  %1455 = vmatmul.mubr.bf16.gmra.mrb[4].mxu1 %v3543_v32  ;;  %v2735_v55 = vpop.eup %2734  ;;  %v688_v13 = vadd.f32 %v3499_v22, %v645_v24  ;;  %v555_v28 = vmul.f32 0.00390625, %v537_v48  ;;  %v689_v11 = vadd.f32 %v3502_v12, %v646_v53  ;;  %v572_v63 = vadd.f32 1e-05, %v556_v14  ;;  %v2689_v24 = vld [vmem:[#allocation5 + $0x160] ss:$24 sps:$4 sm:$0xff]  }
 0x1b4   : > { %1530 = vmatpush1.bf16.msra.mxu0 %v2674_v56  ;;  %2453 = vmatpush1.bf16.msra.mxu1 %v2674_v56  ;;  %v606_v45 = vmul.f32 %v2735_v55, %v3410_v2  ;;  %v644_v2 = vmul.f32 %v3494_v34, %v601_v59  ;;  %v651_v30 = vmul.f32 %v3489_v18, %v608_v58  ;;  %v2697_v53 = vld [vmem:[#allocation5 + $0x1c4] ss:$24 sps:$4 sm:$0xff]  }
 0x1b5   : > { %1351 = vmatprep.mubr.bf16.mxu0 %v3551_v36  ;;  %1464 = vmatprep.mubr.bf16.mxu1 %v3551_v36  ;;  %v3571_v54 = vpack.c.bf16 %v690_v40, %v688_v13  ;;  %v2737_v44 = vpop.eup %2736  ;;  %v607_v56 = vmul.f32 %v2733_v10, %v3413_v27  ;;  %v605_v21 = vmul.f32 %v2735_v55, %v3407_v1  ;;  %2744 = vrsqrt.f32 %v572_v63 }
 0x1b6   : > { %1531 = vmatprep.subr.bf16.mxu0 %v2679_v9  ;;  %2438 = vmatprep.subr.bf16.mxu1 %v2679_v9  ;;  %v649_v31 = vmul.f32 %v3489_v18, %v606_v45  ;;  %v687_v47 = vadd.f32 %v3502_v12, %v644_v2  ;;  %v694_v19 = vadd.f32 %v3499_v22, %v651_v30  ;;  %v571_v9 = vadd.f32 1e-05, %v555_v28  ;;  %v2700_v30 = vld [vmem:[#allocation5 + $0x1f4] ss:$24 sps:$4 sm:$0xff]  }
 0x1b7   : > { %v2739_v61 = vpop.eup %2738  ;;  %v612_v16 = vmul.f32 %v2737_v44, %v3436_v52  ;;  %v650_v10 = vmul.f32 %v3494_v34, %v607_v56  ;;  %v648_v52 = vmul.f32 %v3494_v34, %v605_v21  ;;  %v611_v26 = vmul.f32 %v2737_v44, %v3433_v51  ;;  %v2703_v21 = vld [vmem:[#allocation5 + $0x224] ss:$24 sps:$4 sm:$0xff]  }
 0x1b8   : > { %1532 = vmatpush1.bf16.msra.mxu0 %v2677_v60  ;;  %2454 = vmatpush1.bf16.msra.mxu1 %v2677_v60  ;;  %v692_v39 = vadd.f32 %v3499_v22, %v649_v31  ;;  %v3585_v27 = vpack.c.bf16 %v689_v11, %v687_v47  ;;  %v610_v60 = vmul.f32 %v2739_v61, %v3430_v49  ;;  %2746 = vrsqrt.f32 %v571_v9  ;;  %v2694_v49 = vld [vmem:[#allocation5 + $0x194] ss:$24 sps:$4 sm:$0xff]   ;;  %v2701_v9 = vld [vmem:[#allocation5 + $0x220] ss:$24 sps:$4 sm:$0xff]  }
 0x1b9   : > { %1533 = vmatprep.subr.bf16.mxu0 %v2682_v37  ;;  %2439 = vmatprep.subr.bf16.mxu1 %v2682_v37  ;;  %v2691_v37 = vld [vmem:[#allocation5 + $0x164] ss:$24 sps:$4 sm:$0xff]   ;;  %v655_v55 = vmul.f32 %v3489_v18, %v612_v16  ;;  %v693_v5 = vadd.f32 %v3502_v12, %v650_v10  ;;  %v691_v42 = vadd.f32 %v3502_v12, %v648_v52 }
 0x1ba   : > { %v3591_v1 = vpack.c.bf16 %v694_v19, %v692_v39  ;;  %v653_v25 = vmul.f32 %v3489_v18, %v610_v60  ;;  %v609_v59 = vmul.f32 %v2739_v61, %v3427_v46  ;;  %v654_v13 = vmul.f32 %v3494_v34, %v611_v26  ;;  %v2698_v61 = vld [vmem:[#allocation5 + $0x1f0] ss:$24 sps:$4 sm:$0xff]  }
 0x1bb   : > { %1352 = vmatmul.mubr.bf16.gmra.mrb[8].mxu0 %v3565_v57  ;;  %1465 = vmatmul.mubr.bf16.gmra.mrb[8].mxu1 %v3565_v57  ;;  %v2741_v38 = vpop.eup %2740  ;;  %v698_v40 = vadd.f32 %v3499_v22, %v655_v55  ;;  %v3605_v48 = vpack.c.bf16 %v693_v5, %v691_v42  ;;  %v2704_v55 = vld [vmem:[#allocation5 + $0x250] ss:$24 sps:$4 sm:$0xff]   ;;  %v2707_v5 = vld [vmem:[#allocation5 + $0x280] ss:$24 sps:$4 sm:$0xff]  }
 0x1bc   : > { %1534 = vmatpush1.bf16.msra.mxu0 %v2680_v43  ;;  %2455 = vmatpush1.bf16.msra.mxu1 %v2680_v43  ;;  %v2743_v17 = vpop.eup %2742  ;;  %v616_v58 = vmul.f32 %v2741_v38, %v3456_v20  ;;  %v2692_v43 = vld [vmem:[#allocation5 + $0x190] ss:$24 sps:$4 sm:$0xff]   ;;  %v696_v51 = vadd.f32 %v3499_v22, %v653_v25  ;;  %v652_v20 = vmul.f32 %v3494_v34, %v609_v59 }
 0x1bd   : > { %1361 = vmatprep.mubr.bf16.mxu0 %v3571_v54  ;;  %1474 = vmatprep.mubr.bf16.mxu1 %v3571_v54  ;;  %v614_v45 = vmul.f32 %v2743_v17, %v3450_v7  ;;  %v697_v44 = vadd.f32 %v3502_v12, %v654_v13  ;;  %v615_v28 = vmul.f32 %v2741_v38, %v3453_v0  ;;  %v2710_v26 = vld [vmem:[#allocation5 + $0x2b0] ss:$24 sps:$4 sm:$0xff]  }
 0x1be   : > { %1535 = vmatprep.subr.bf16.mxu0 %v2685_v29  ;;  %2440 = vmatprep.subr.bf16.mxu1 %v2685_v29  ;;  %v3611_v46 = vpack.c.bf16 %v698_v40, %v696_v51  ;;  %v659_v14 = vmul.f32 %v3489_v18, %v616_v58  ;;  %v2695_v29 = vld [vmem:[#allocation5 + $0x1c0] ss:$24 sps:$4 sm:$0xff]   ;;  %v695_v31 = vadd.f32 %v3502_v12, %v652_v20  ;;  %v2715_v40 = vld [vmem:[#allocation5 + $0x2e4] ss:$24 sps:$4 sm:$0xff]  }
 0x1bf   : > { %v2745_v7 = vpop.eup %2744  ;;  %v657_v2 = vmul.f32 %v3489_v18, %v614_v45  ;;  %v613_v11 = vmul.f32 %v2743_v17, %v3447_v3  ;;  %v658_v0 = vmul.f32 %v3494_v34, %v615_v28  ;;  %v2709_v17 = vld [vmem:[#allocation5 + $0x284] ss:$24 sps:$4 sm:$0xff]  }
 0x1c0   : > { %1536 = vmatpush1.bf16.msra.mxu0 %v2683_v15  ;;  %2456 = vmatpush1.bf16.msra.mxu1 %v2683_v15  ;;  %v620_v56 = vmul.f32 %v2745_v7, %v3476_v50  ;;  %v3625_v47 = vpack.c.bf16 %v697_v44, %v695_v31  ;;  %v619_v10 = vmul.f32 %v2745_v7, %v3473_v8 }
 0x1c1   : > { %1537 = vmatprep.subr.bf16.mxu0 %v2688_v4  ;;  %2441 = vmatprep.subr.bf16.mxu1 %v2688_v4  ;;  %v702_v4 = vadd.f32 %v3499_v22, %v659_v14  ;;  %v700_v63 = vadd.f32 %v3499_v22, %v657_v2  ;;  %v656_v50 = vmul.f32 %v3494_v34, %v613_v11 }
 0x1c2   : > { %v2747_v15 = vpop.eup %2746  ;;  %v663_v16 = vmul.f32 %v3489_v18, %v620_v56 }
 0x1c3   : > { %1362 = vmatmul.mubr.bf16.gmra.mrb[12].mxu0 %v3585_v27  ;;  %1475 = vmatmul.mubr.bf16.gmra.mrb[12].mxu1 %v3585_v27  ;;  %v618_v19 = vmul.f32 %v2747_v15, %v3470_v6  ;;  %v3631_v3 = vpack.c.bf16 %v702_v4, %v700_v63  ;;  %v701_v6 = vadd.f32 %v3502_v12, %v658_v0 }
 0x1c4   : > { %1538 = vmatpush1.bf16.msra.mxu0 %v2686_v62  ;;  %2457 = vmatpush1.bf16.msra.mxu1 %v2686_v62  ;;  %v2706_v62 = vld [vmem:[#allocation5 + $0x254] ss:$24 sps:$4 sm:$0xff]   ;;  %v699_v60 = vadd.f32 %v3502_v12, %v656_v50  ;;  %v617_v52 = vmul.f32 %v2747_v15, %v3467_v23 }
 0x1c5   : > { %1371 = vmatprep.mubr.bf16.mxu0 %v3591_v1  ;;  %1484 = vmatprep.mubr.bf16.mxu1 %v3591_v1  ;;  %v661_v39 = vmul.f32 %v3489_v18, %v618_v19  ;;  %v662_v18 = vmul.f32 %v3494_v34, %v619_v10  ;;  %v2712_v23 = vld [vmem:[#allocation5 + $0x2b4] ss:$24 sps:$4 sm:$0xff]  }
 0x1c6   : > { %1539 = vmatprep.subr.bf16.mxu0 %v2691_v37  ;;  %2442 = vmatprep.subr.bf16.mxu1 %v2691_v37  ;;  %v706_v37 = vadd.f32 %v3499_v22, %v663_v16  ;;  %v719_v38 = vpack.c.bf16 %v701_v6, %v699_v60 }
 0x1c7   : > { %v705_v25 = vadd.f32 %v3502_v12, %v662_v18 }
 0x1c8   : > { %1540 = vmatpush1.bf16.msra.mxu0 %v2689_v24  ;;  %2458 = vmatpush1.bf16.msra.mxu1 %v2689_v24  ;;  %v704_v24 = vadd.f32 %v3499_v22, %v661_v39 }
 0x1c9   : > { %1541 = vmatprep.subr.bf16.mxu0 %v2694_v49  ;;  %2443 = vmatprep.subr.bf16.mxu1 %v2694_v49  ;;  %v660_v49 = vmul.f32 %v3494_v34, %v617_v52  ;;  %v2713_v34 = vld [vmem:[#allocation5 + $0x2e0] ss:$24 sps:$4 sm:$0xff]  }
 0x1ca   : > { %v722_v8 = vpack.c.bf16 %v706_v37, %v704_v24 }
 0x1cb   : > { %1372 = vmatmul.mubr.bf16.gmra.mrb[16].mxu0 %v3605_v48  ;;  %1485 = vmatmul.mubr.bf16.gmra.mrb[16].mxu1 %v3605_v48  ;;  %v703_v22 = vadd.f32 %v3502_v12, %v660_v49 }
 0x1cc   : > { %1542 = vmatpush1.bf16.msra.mxu0 %v2692_v43  ;;  %2459 = vmatpush1.bf16.msra.mxu1 %v2692_v43 }
 0x1cd   : > { %1381 = vmatprep.mubr.bf16.mxu0 %v3611_v46  ;;  %1494 = vmatprep.mubr.bf16.mxu1 %v3611_v46  ;;  %v721_v42 = vpack.c.bf16 %v705_v25, %v703_v22 }
 0x1ce   : > { %1543 = vmatprep.subr.bf16.mxu0 %v2697_v53  ;;  %2444 = vmatprep.subr.bf16.mxu1 %v2697_v53 }
 0x1d0   : > { %1544 = vmatpush1.bf16.msra.mxu0 %v2695_v29  ;;  %2460 = vmatpush1.bf16.msra.mxu1 %v2695_v29 }
 0x1d1   : > { %1545 = vmatprep.subr.bf16.mxu0 %v2700_v30  ;;  %2445 = vmatprep.subr.bf16.mxu1 %v2700_v30 }
 0x1d3   : > { %1382 = vmatmul.mubr.bf16.gmra.mrb[20].mxu0 %v3625_v47  ;;  %1495 = vmatmul.mubr.bf16.gmra.mrb[20].mxu1 %v3625_v47 }
 0x1d4   : > { %1546 = vmatpush1.bf16.msra.mxu0 %v2698_v61  ;;  %2461 = vmatpush1.bf16.msra.mxu1 %v2698_v61 }
 0x1d5   : > { %1391 = vmatprep.mubr.bf16.mxu0 %v3631_v3  ;;  %1504 = vmatprep.mubr.bf16.mxu1 %v3631_v3 }
 0x1d6   : > { %1547 = vmatprep.subr.bf16.mxu0 %v2703_v21  ;;  %2446 = vmatprep.subr.bf16.mxu1 %v2703_v21 }
 0x1d8   : > { %1548 = vmatpush1.bf16.msra.mxu0 %v2701_v9  ;;  %2462 = vmatpush1.bf16.msra.mxu1 %v2701_v9 }
 0x1d9   : > { %1549 = vmatprep.subr.bf16.mxu0 %v2706_v62  ;;  %2447 = vmatprep.subr.bf16.mxu1 %v2706_v62 }
 0x1db   : > { %1392 = vmatmul.mubr.bf16.gmra.mrb[24].mxu0 %v719_v38  ;;  %1505 = vmatmul.mubr.bf16.gmra.mrb[24].mxu1 %v719_v38 }
 0x1dc   : > { %1550 = vmatpush1.bf16.msra.mxu0 %v2704_v55  ;;  %2463 = vmatpush1.bf16.msra.mxu1 %v2704_v55 }
 0x1dd   : > { %1401 = vmatprep.mubr.bf16.mxu0 %v722_v8  ;;  %1514 = vmatprep.mubr.bf16.mxu1 %v722_v8 }
 0x1de   : > { %1551 = vmatprep.subr.bf16.mxu0 %v2709_v17  ;;  %2448 = vmatprep.subr.bf16.mxu1 %v2709_v17 }
 0x1e0   : > { %1552 = vmatpush1.bf16.msra.mxu0 %v2707_v5  ;;  %2464 = vmatpush1.bf16.msra.mxu1 %v2707_v5 }
 0x1e1   : > { %1553 = vmatprep.subr.bf16.mxu0 %v2712_v23  ;;  %2449 = vmatprep.subr.bf16.mxu1 %v2712_v23 }
 0x1e3   : > { %1402 = vmatmul.mubr.bf16.gmra.mrb[28].mxu0 %v721_v42  ;;  %1515 = vmatmul.mubr.bf16.gmra.mrb[28].mxu1 %v721_v42 }
 0x1e4   : > { %1554 = vmatpush1.bf16.msra.mxu0 %v2710_v26  ;;  %2465 = vmatpush1.bf16.msra.mxu1 %v2710_v26 }
 0x1e5   : > { %1557 = vmatprep.mubr.bf16.mxu0 %v3517_v33  ;;  %1597 = vmatprep.mubr.bf16.mxu1 %v3591_v1 }
 0x1e6   : > { %1555 = vmatprep.subr.bf16.mxu0 %v2715_v40  ;;  %2450 = vmatprep.subr.bf16.mxu1 %v2715_v40 }
 0x1e8   : > { %1556 = vmatpush1.bf16.msra.mxu0 %v2713_v34  ;;  %2466 = vmatpush1.bf16.msra.mxu1 %v2713_v34 }
 0x1eb   : > { %1558 = vmatmul.mubr.bf16.vlgmr.msra.gmra.mrb[32].mxu0 %v3519_v35  ;;  %1598 = vmatmul.mubr.bf16.vlgmr.msra.gmra.mrb[32].mxu1 %v3605_v48 }
 0x1ec   : > { %1567 = vmatprep.mubr.bf16.mxu0 %v3532_v41  ;;  %1607 = vmatprep.mubr.bf16.mxu1 %v3611_v46 }
 0x1f3   : > { %1568 = vmatmul.mubr.bf16.gmra.mrb[36].mxu0 %v3543_v32  ;;  %1608 = vmatmul.mubr.bf16.gmra.mrb[36].mxu1 %v3625_v47 }
 0x1f4   : > { %1577 = vmatprep.mubr.bf16.mxu0 %v3551_v36  ;;  %1617 = vmatprep.mubr.bf16.mxu1 %v3631_v3 }
 0x1fb   : > { %1578 = vmatmul.mubr.bf16.gmra.mrb[40].mxu0 %v3565_v57  ;;  %1618 = vmatmul.mubr.bf16.gmra.mrb[40].mxu1 %v719_v38 }
 0x1fc   : > { %1587 = vmatprep.mubr.bf16.mxu0 %v3571_v54  ;;  %1627 = vmatprep.mubr.bf16.mxu1 %v722_v8 }
 0x203   : > { %1588 = vmatmul.mubr.bf16.gmra.mrb[44].mxu0 %v3585_v27  ;;  %1628 = vmatmul.mubr.bf16.gmra.mrb[44].mxu1 %v721_v42 }
 0x27e   : > { %v1333_v12 = vpop.f32.mrb[0].mxu0  ;;  %v1446_v33 = vpop.f32.mrb[0].mxu1 }
 0x27f   : > { %v1335_v35 = vpop.f32.mrb[1].mxu0  ;;  %v1448_v41 = vpop.f32.mrb[1].mxu1 }
 0x280   : > { %v2384_v32 = vpack.c.bf16 %v1335_v35, %v1333_v12  ;;  %v2400_v36 = vpack.c.bf16 %v1448_v41, %v1446_v33  ;;  %v1337_v1 = vpop.f32.mrb[2].mxu0  ;;  %v1450_v59 = vpop.f32.mrb[2].mxu1 }
 0x281   : > { %v1339_v57 = vpop.f32.mrb[3].mxu0  ;;  %v1452_v58 = vpop.f32.mrb[3].mxu1 }
 0x282   : > { %1734 = vst [vmem:[%s3665_s3] sm:$0xff] %v2384_v32  ;;  %1846 = vst [vmem:[%s3669_s6] sm:$0xff] %v2400_v36  ;;  %v2385_v54 = vpack.c.bf16 %v1339_v57, %v1337_v1  ;;  %v2401_v27 = vpack.c.bf16 %v1452_v58, %v1450_v59 }
 0x284   : > { %1735 = vst [vmem:[%s3665_s3 + $0x8] sm:$0xff] %v2385_v54  ;;  %1847 = vst [vmem:[%s3669_s6 + $0x8] sm:$0xff] %v2401_v27 }
 0x286   : > { %v1343_v43 = vpop.f32.mrb[4].mxu0  ;;  %v1456_v45 = vpop.f32.mrb[4].mxu1 }
 0x287   : > { %v1345_v48 = vpop.f32.mrb[5].mxu0  ;;  %v1458_v51 = vpop.f32.mrb[5].mxu1 }
 0x288   : > { %v2386_v13 = vpack.c.bf16 %v1345_v48, %v1343_v43  ;;  %v2402_v53 = vpack.c.bf16 %v1458_v51, %v1456_v45  ;;  %v1347_v46 = vpop.f32.mrb[6].mxu0  ;;  %v1460_v20 = vpop.f32.mrb[6].mxu1 }
 0x289   : > { %v1349_v14 = vpop.f32.mrb[7].mxu0  ;;  %v1462_v7 = vpop.f32.mrb[7].mxu1 }
 0x28a   : > { %1736 = vst [vmem:[%s3665_s3 + $0x10] sm:$0xff] %v2386_v13  ;;  %1848 = vst [vmem:[%s3669_s6 + $0x10] sm:$0xff] %v2402_v53  ;;  %v2387_v29 = vpack.c.bf16 %v1349_v14, %v1347_v46  ;;  %v2403_v2 = vpack.c.bf16 %v1462_v7, %v1460_v20 }
 0x28c   : > { %1737 = vst [vmem:[%s3665_s3 + $0x18] sm:$0xff] %v2387_v29  ;;  %1849 = vst [vmem:[%s3669_s6 + $0x18] sm:$0xff] %v2403_v2 }
 0x28e   : > { %v1353_v30 = vpop.f32.mrb[8].mxu0  ;;  %v1466_v44 = vpop.f32.mrb[8].mxu1 }
 0x28f   : > { %v1355_v28 = vpop.f32.mrb[9].mxu0  ;;  %v1468_v15 = vpop.f32.mrb[9].mxu1 }
 0x290   : > { %v2388_v31 = vpack.c.bf16 %v1355_v28, %v1353_v30  ;;  %v2404_v4 = vpack.c.bf16 %v1468_v15, %v1466_v44  ;;  %v1357_v11 = vpop.f32.mrb[10].mxu0  ;;  %v1470_v56 = vpop.f32.mrb[10].mxu1 }
 0x291   : > { %v1359_v61 = vpop.f32.mrb[11].mxu0  ;;  %v1472_v63 = vpop.f32.mrb[11].mxu1 }
 0x292   : > { %1738 = vst [vmem:[%s3665_s3 + $0x20] sm:$0xff] %v2388_v31  ;;  %1850 = vst [vmem:[%s3669_s6 + $0x20] sm:$0xff] %v2404_v4  ;;  %v2389_v47 = vpack.c.bf16 %v1359_v61, %v1357_v11  ;;  %v2405_v0 = vpack.c.bf16 %v1472_v63, %v1470_v56 }
 0x294   : > { %1739 = vst [vmem:[%s3665_s3 + $0x28] sm:$0xff] %v2389_v47  ;;  %1851 = vst [vmem:[%s3669_s6 + $0x28] sm:$0xff] %v2405_v0 }
 0x296   : > { %v1363_v19 = vpop.f32.mrb[12].mxu0  ;;  %v1476_v21 = vpop.f32.mrb[12].mxu1 }
 0x297   : > { %v1365_v3 = vpop.f32.mrb[13].mxu0  ;;  %v1478_v50 = vpop.f32.mrb[13].mxu1 }
 0x298   : > { %v2390_v16 = vpack.c.bf16 %v1365_v3, %v1363_v19  ;;  %v2406_v9 = vpack.c.bf16 %v1478_v50, %v1476_v21  ;;  %v1367_v62 = vpop.f32.mrb[14].mxu0  ;;  %v1480_v6 = vpop.f32.mrb[14].mxu1 }
 0x299   : > { %v1369_v39 = vpop.f32.mrb[15].mxu0  ;;  %v1482_v10 = vpop.f32.mrb[15].mxu1 }
 0x29a   : > { %1740 = vst [vmem:[%s3665_s3 + $0x30] sm:$0xff] %v2390_v16  ;;  %1852 = vst [vmem:[%s3669_s6 + $0x30] sm:$0xff] %v2406_v9  ;;  %v2391_v60 = vpack.c.bf16 %v1369_v39, %v1367_v62  ;;  %v2407_v37 = vpack.c.bf16 %v1482_v10, %v1480_v6 }
 0x29c   : > { %1741 = vst [vmem:[%s3665_s3 + $0x38] sm:$0xff] %v2391_v60  ;;  %1853 = vst [vmem:[%s3669_s6 + $0x38] sm:$0xff] %v2407_v37 }
 0x29e   : > { %v1373_v52 = vpop.f32.mrb[16].mxu0  ;;  %v1486_v55 = vpop.f32.mrb[16].mxu1 }
 0x29f   : > { %v1375_v38 = vpop.f32.mrb[17].mxu0  ;;  %v1488_v24 = vpop.f32.mrb[17].mxu1 }
 0x2a0   : > { %v2392_v18 = vpack.c.bf16 %v1375_v38, %v1373_v52  ;;  %v2408_v17 = vpack.c.bf16 %v1488_v24, %v1486_v55  ;;  %v1377_v8 = vpop.f32.mrb[18].mxu0  ;;  %v1490_v49 = vpop.f32.mrb[18].mxu1 }
 0x2a1   : > { %v1379_v5 = vpop.f32.mrb[19].mxu0  ;;  %v1492_v23 = vpop.f32.mrb[19].mxu1 }
 0x2a2   : > { %1742 = vst [vmem:[%s3665_s3 + $0x40] sm:$0xff] %v2392_v18  ;;  %1854 = vst [vmem:[%s3669_s6 + $0x40] sm:$0xff] %v2408_v17  ;;  %v2393_v25 = vpack.c.bf16 %v1379_v5, %v1377_v8  ;;  %v2409_v22 = vpack.c.bf16 %v1492_v23, %v1490_v49 }
 0x2a4   : > { %1743 = vst [vmem:[%s3665_s3 + $0x48] sm:$0xff] %v2393_v25  ;;  %1855 = vst [vmem:[%s3669_s6 + $0x48] sm:$0xff] %v2409_v22 }
 0x2a6   : > { %v1383_v26 = vpop.f32.mrb[20].mxu0  ;;  %v1496_v42 = vpop.f32.mrb[20].mxu1 }
 0x2a7   : > { %v1385_v40 = vpop.f32.mrb[21].mxu0  ;;  %v1498_v34 = vpop.f32.mrb[21].mxu1 }
 0x2a8   : > { %v2394_v12 = vpack.c.bf16 %v1385_v40, %v1383_v26  ;;  %v2410_v33 = vpack.c.bf16 %v1498_v34, %v1496_v42  ;;  %v1387_v35 = vpop.f32.mrb[22].mxu0  ;;  %v1500_v41 = vpop.f32.mrb[22].mxu1 }
 0x2a9   : > { %v1389_v32 = vpop.f32.mrb[23].mxu0  ;;  %v1502_v36 = vpop.f32.mrb[23].mxu1 }
 0x2aa   : > { %1744 = vst [vmem:[%s3665_s3 + $0x50] sm:$0xff] %v2394_v12  ;;  %1856 = vst [vmem:[%s3669_s6 + $0x50] sm:$0xff] %v2410_v33  ;;  %v2395_v1 = vpack.c.bf16 %v1389_v32, %v1387_v35  ;;  %v2411_v59 = vpack.c.bf16 %v1502_v36, %v1500_v41 }
 0x2ac   : > { %1745 = vst [vmem:[%s3665_s3 + $0x58] sm:$0xff] %v2395_v1  ;;  %1857 = vst [vmem:[%s3669_s6 + $0x58] sm:$0xff] %v2411_v59 }
 0x2ae   : > { %v1393_v57 = vpop.f32.mrb[24].mxu0  ;;  %v1506_v58 = vpop.f32.mrb[24].mxu1 }
 0x2af   : > { %v1395_v54 = vpop.f32.mrb[25].mxu0  ;;  %v1508_v27 = vpop.f32.mrb[25].mxu1 }
 0x2b0   : > { %v2396_v43 = vpack.c.bf16 %v1395_v54, %v1393_v57  ;;  %v2412_v45 = vpack.c.bf16 %v1508_v27, %v1506_v58  ;;  %v1397_v48 = vpop.f32.mrb[26].mxu0  ;;  %v1510_v51 = vpop.f32.mrb[26].mxu1 }
 0x2b1   : > { %v1399_v13 = vpop.f32.mrb[27].mxu0  ;;  %v1512_v53 = vpop.f32.mrb[27].mxu1 }
 0x2b2   : > { %1746 = vst [vmem:[%s3665_s3 + $0x60] sm:$0xff] %v2396_v43  ;;  %1858 = vst [vmem:[%s3669_s6 + $0x60] sm:$0xff] %v2412_v45  ;;  %v2397_v46 = vpack.c.bf16 %v1399_v13, %v1397_v48  ;;  %v2413_v20 = vpack.c.bf16 %v1512_v53, %v1510_v51 }
 0x2b4   : > { %1747 = vst [vmem:[%s3665_s3 + $0x68] sm:$0xff] %v2397_v46  ;;  %1859 = vst [vmem:[%s3669_s6 + $0x68] sm:$0xff] %v2413_v20 }
 0x2b6   : > { %v1403_v14 = vpop.f32.mrb[28].mxu0  ;;  %v1516_v7 = vpop.f32.mrb[28].mxu1 }
 0x2b7   : > { %v1405_v29 = vpop.f32.mrb[29].mxu0  ;;  %v1518_v2 = vpop.f32.mrb[29].mxu1 }
 0x2b8   : > { %v2398_v30 = vpack.c.bf16 %v1405_v29, %v1403_v14  ;;  %v2414_v44 = vpack.c.bf16 %v1518_v2, %v1516_v7  ;;  %v1407_v28 = vpop.f32.mrb[30].mxu0  ;;  %v1520_v15 = vpop.f32.mrb[30].mxu1 }
 0x2b9   : > { %v1409_v31 = vpop.f32.mrb[31].mxu0  ;;  %v1522_v4 = vpop.f32.mrb[31].mxu1 }
 0x2ba   : > { %1748 = vst [vmem:[%s3665_s3 + $0x70] sm:$0xff] %v2398_v30  ;;  %1860 = vst [vmem:[%s3669_s6 + $0x70] sm:$0xff] %v2414_v44  ;;  %v2399_v11 = vpack.c.bf16 %v1409_v31, %v1407_v28  ;;  %v2415_v56 = vpack.c.bf16 %v1522_v4, %v1520_v15 }
 0x2bc   : > { %1749 = vst [vmem:[%s3665_s3 + $0x78] sm:$0xff] %v2399_v11  ;;  %1861 = vst [vmem:[%s3669_s6 + $0x78] sm:$0xff] %v2415_v56 }
 0x2bd   : > { %2819 = shalt.err (!%p2816_p1)
}
 0x2be   : > { %s2820_s3 = scalar_lea.hbm %s3709_s15, 2048  ;;  %s2824_s10 = scalar_lea.hbm %s3867_s5, 8192 }
 0x2bf   : > { %p2821_p2 = scmp.ne.s32.totalorder %s3709_s15, %s2820_s3  ;;  %p2825_p9 = scmp.lt.u32.totalorder %s3709_s15, %s3867_s5 }
 0x2c0   : > { %p2826_p0 = scmp.lt.u32.totalorder %s2824_s10, %s2820_s3  ;;  %p2828_p8 = scmp.lt.u32.totalorder %s2820_s3, %s3709_s15 }
 0x2c1   : > { %p2822_p4 = pnand %p2821_p2, %p3119_p11 }
 0x2c2   : > { %p2827_p6 = por %p2826_p0, %p2825_p9 }
 0x2c3   : > { %p2823_p5 = pneg %p2822_p4 }
 0x2c4   : > { %p2829_p10 = por %p2828_p8, %p2827_p6 }
 0x2c6   : > { %p2830_p12 = pnand %p2829_p10, %p2823_p5 }
 0x2c8   : > { %2833 = shalt.err (!%p2830_p12)
}
 0x2c9   : > { %s2977_s30 = smov 128   ;;  %s2978_s26 = smov 8   ;;  %v1559_v61 = vpop.f32.mrb[32].mxu0  ;;  %v1599_v63 = vpop.f32.mrb[32].mxu1 }
 0x2ca   : > { %2474 = dma.vmem_to_hbm [thread:$0]  (%p3119_p11), %s3713_s24, 2048, %s3709_s15, %s3725_s7, %s2977_s30, %s2977_s30, %s2978_s26  }
 0x2cb   : > { %s1975_s9 = scalar_lea.sflag [#allocation4], %s3184_s21  ;;  %s2834_s16 = scalar_lea.vmem %s3721_s25, 2048 }
 0x2cc   : > { %p2835_p13 = scmp.ne.s32.totalorder %s3721_s25, %s2834_s16  ;;  %s2979_s18 = smov [#allocation7]  }
 0x2cd   : > { %s2838_s11 = sshll.u32 %s2979_s18, 4  ;;  %s2839_s11 = int_to_ptr.vmem [resolvable:$false] %s2838_s11 }
 0x2ce   : > { %p2836_p3 = pnand %p2835_p13, %p3119_p11  ;;  %s2840_s3 = scalar_lea.vmem %s2839_s11, 4096 }
 0x2cf   : > { %p2841_p1 = scmp.lt.s32.totalorder %s3721_s25, %s2839_s11  ;;  %p2842_p2 = scmp.lt.s32.totalorder %s2840_s3, %s2834_s16 }
 0x2d0   : > { %p2837_p7 = pneg %p2836_p3 }
 0x2d1   : > { %p2843_p4 = por %p2842_p2, %p2841_p1 }
 0x2d3   : > { %p2844_p5 = pnand %p2843_p4, %p2837_p7 }
 0x2d5   : > { %2847 = shalt.err (!%p2844_p5)
}
 0x2d6   : > { %s2848_s24 = scalar_lea.hbm %s3719_s4, 2048  ;;  %s2852_s20 = scalar_lea.hbm %s3901_s17, 8192 }
 0x2d7   : > { %p2849_p9 = scmp.ne.s32.totalorder %s3719_s4, %s2848_s24  ;;  %p2853_p8 = scmp.lt.u32.totalorder %s3719_s4, %s3901_s17 }
 0x2d8   : > { %p2854_p10 = scmp.lt.u32.totalorder %s2852_s20, %s2848_s24  ;;  %p2856_p13 = scmp.lt.u32.totalorder %s2848_s24, %s3719_s4 }
 0x2d9   : > { %p2850_p0 = pnand %p2849_p9, %p3119_p11 }
 0x2da   : > { %p2855_p12 = por %p2854_p10, %p2853_p8 }
 0x2db   : > { %p2851_p6 = pneg %p2850_p0 }
 0x2dc   : > { %p2857_p3 = por %p2856_p13, %p2855_p12 }
 0x2de   : > { %p2858_p7 = pnand %p2857_p3, %p2851_p6 }
 0x2e0   : > { %2861 = shalt.err (!%p2858_p7)
}
 0x2e1   : > { %2473 = dma.vmem_to_hbm [thread:$0]  (%p3119_p11), %s3721_s25, 2048, %s3719_s4, %s1975_s9, %s2977_s30, %s2977_s30, %s2978_s26   ;;  %v1561_v47 = vpop.f32.mrb[33].mxu0  ;;  %v1601_v0 = vpop.f32.mrb[33].mxu1 }
 0x2e2   : > { %v2416_v19 = vpack.c.bf16 %v1561_v47, %v1559_v61  ;;  %v2424_v21 = vpack.c.bf16 %v1601_v0, %v1599_v63  ;;  %v1563_v3 = vpop.f32.mrb[34].mxu0  ;;  %v1603_v50 = vpop.f32.mrb[34].mxu1  ;;  %s3780_s14 = scalar_lea.vmem [#allocation10], %s3662_s19  ;;  %s3902_s4 = sld [smem:[#allocation22_spill]] }
 0x2e3   : > { %v1565_v16 = vpop.f32.mrb[35].mxu0  ;;  %v1605_v9 = vpop.f32.mrb[35].mxu1  ;;  %s2039_s21 = sshll.u32 %s3780_s14, 4  ;;  %s2980_s18 = smov [#allocation10]   ;;  %s3803_s21 = int_to_ptr.vmem [resolvable:$true] %s2039_s21 }
 0x2e4   : > { %1958 = vst [vmem:[%s3780_s14] sm:$0xff] %v2416_v19  ;;  %1966 = vst [vmem:[%s3780_s14 + $0x40] sm:$0xff] %v2424_v21  ;;  %v2417_v62 = vpack.c.bf16 %v1565_v16, %v1563_v3  ;;  %v2425_v6 = vpack.c.bf16 %v1605_v9, %v1603_v50  ;;  %v1569_v39 = vpop.f32.mrb[36].mxu0  ;;  %v1609_v10 = vpop.f32.mrb[36].mxu1  ;;  %s2862_s16 = scalar_lea.vmem %s3803_s21, 2048  ;;  %s2866_s11 = sshll.u32 %s2980_s18, 4  ;;  %s2867_s11 = int_to_ptr.vmem [resolvable:$false] %s2866_s11 }
 0x2e5   : > { %v1571_v60 = vpop.f32.mrb[37].mxu0  ;;  %v1611_v37 = vpop.f32.mrb[37].mxu1  ;;  %p2863_p1 = scmp.ne.s32.totalorder %s3803_s21, %s2862_s16  ;;  %s2868_s3 = scalar_lea.vmem %s2867_s11, 4096 }
 0x2e6   : > { %1959 = vst [vmem:[%s3780_s14 + $0x8] sm:$0xff] %v2417_v62  ;;  %1967 = vst [vmem:[%s3780_s14 + $0x48] sm:$0xff] %v2425_v6  ;;  %v2418_v52 = vpack.c.bf16 %v1571_v60, %v1569_v39  ;;  %v2426_v55 = vpack.c.bf16 %v1611_v37, %v1609_v10  ;;  %v1573_v38 = vpop.f32.mrb[38].mxu0  ;;  %v1613_v24 = vpop.f32.mrb[38].mxu1  ;;  %p2869_p5 = scmp.lt.s32.totalorder %s3803_s21, %s2867_s11  ;;  %p2870_p9 = scmp.lt.s32.totalorder %s2868_s3, %s2862_s16 }
 0x2e7   : > { %v1575_v18 = vpop.f32.mrb[39].mxu0  ;;  %v1615_v17 = vpop.f32.mrb[39].mxu1  ;;  %p2864_p2 = pnand %p2863_p1, %p3119_p11 }
 0x2e8   : > { %1960 = vst [vmem:[%s3780_s14 + $0x10] sm:$0xff] %v2418_v52  ;;  %1968 = vst [vmem:[%s3780_s14 + $0x50] sm:$0xff] %v2426_v55  ;;  %v2419_v8 = vpack.c.bf16 %v1575_v18, %v1573_v38  ;;  %v2427_v49 = vpack.c.bf16 %v1615_v17, %v1613_v24  ;;  %v1579_v5 = vpop.f32.mrb[40].mxu0  ;;  %v1619_v23 = vpop.f32.mrb[40].mxu1  ;;  %s3801_s9 = scalar_lea.hbm %s3902_s4, %s3701_s13  ;;  %p2871_p0 = por %p2870_p9, %p2869_p5 }
 0x2e9   : > { %v1581_v25 = vpop.f32.mrb[41].mxu0  ;;  %v1621_v22 = vpop.f32.mrb[41].mxu1  ;;  %p2865_p4 = pneg %p2864_p2 }
 0x2ea   : > { %1961 = vst [vmem:[%s3780_s14 + $0x18] sm:$0xff] %v2419_v8  ;;  %1969 = vst [vmem:[%s3780_s14 + $0x58] sm:$0xff] %v2427_v49  ;;  %v2420_v26 = vpack.c.bf16 %v1581_v25, %v1579_v5  ;;  %v2428_v42 = vpack.c.bf16 %v1621_v22, %v1619_v23  ;;  %v1583_v40 = vpop.f32.mrb[42].mxu0  ;;  %v1623_v34 = vpop.f32.mrb[42].mxu1 }
 0x2eb   : > { %v1585_v12 = vpop.f32.mrb[43].mxu0  ;;  %v1625_v33 = vpop.f32.mrb[43].mxu1  ;;  %p2872_p6 = pnand %p2871_p0, %p2865_p4 }
 0x2ec   : > { %1962 = vst [vmem:[%s3780_s14 + $0x20] sm:$0xff] %v2420_v26  ;;  %1970 = vst [vmem:[%s3780_s14 + $0x60] sm:$0xff] %v2428_v42  ;;  %v2421_v35 = vpack.c.bf16 %v1585_v12, %v1583_v40  ;;  %v2429_v41 = vpack.c.bf16 %v1625_v33, %v1623_v34  ;;  %v1589_v32 = vpop.f32.mrb[44].mxu0  ;;  %v1629_v36 = vpop.f32.mrb[44].mxu1 }
 0x2ed   : > { %v1591_v1 = vpop.f32.mrb[45].mxu0  ;;  %v1631_v59 = vpop.f32.mrb[45].mxu1 }
 0x2ee   : > { %1963 = vst [vmem:[%s3780_s14 + $0x28] sm:$0xff] %v2421_v35  ;;  %1971 = vst [vmem:[%s3780_s14 + $0x68] sm:$0xff] %v2429_v41  ;;  %v2422_v57 = vpack.c.bf16 %v1591_v1, %v1589_v32  ;;  %v2430_v58 = vpack.c.bf16 %v1631_v59, %v1629_v36  ;;  %v1593_v54 = vpop.f32.mrb[46].mxu0  ;;  %v1633_v27 = vpop.f32.mrb[46].mxu1 }
 0x2ef   : > { %v1595_v43 = vpop.f32.mrb[47].mxu0  ;;  %v1635_v45 = vpop.f32.mrb[47].mxu1 }
 0x2f0   : > { %1964 = vst [vmem:[%s3780_s14 + $0x30] sm:$0xff] %v2422_v57  ;;  %1972 = vst [vmem:[%s3780_s14 + $0x70] sm:$0xff] %v2430_v58  ;;  %v2423_v48 = vpack.c.bf16 %v1595_v43, %v1593_v54  ;;  %v2431_v51 = vpack.c.bf16 %v1635_v45, %v1633_v27 }
 0x2f2   : > { %1965 = vst [vmem:[%s3780_s14 + $0x38] sm:$0xff] %v2423_v48  ;;  %1973 = vst [vmem:[%s3780_s14 + $0x78] sm:$0xff] %v2431_v51 }
 0x2f3   : > { %2875 = shalt.err (!%p2872_p6)
}
 0x2f4   : > { %s2876_s13 = scalar_lea.hbm %s3801_s9, 2048  ;;  %s2880_s6 = scalar_lea.hbm %s3902_s4, 8192 }
 0x2f5   : > { %p2877_p8 = scmp.ne.s32.totalorder %s3801_s9, %s2876_s13  ;;  %p2881_p13 = scmp.lt.u32.totalorder %s3801_s9, %s3902_s4 }
 0x2f6   : > { %p2882_p3 = scmp.lt.u32.totalorder %s2880_s6, %s2876_s13  ;;  %p2884_p1 = scmp.lt.u32.totalorder %s2876_s13, %s3801_s9 }
 0x2f7   : > { %p2878_p10 = pnand %p2877_p8, %p3119_p11 }
 0x2f8   : > { %p2883_p7 = por %p2882_p3, %p2881_p13 }
 0x2f9   : > { %p2879_p12 = pneg %p2878_p10 }
 0x2fa   : > { %p2885_p2 = por %p2884_p1, %p2883_p7 }
 0x2fc   : > { %p2886_p4 = pnand %p2885_p2, %p2879_p12 }
 0x2fe   : > { %2889 = shalt.err (!%p2886_p4)
}
 0x2ff   : > { %2475 = dma.vmem_to_hbm [thread:$0]  (%p3119_p11), %s3803_s21, 2048, %s3801_s9, %s3725_s7, %s2977_s30, %s2977_s30, %s2978_s26  }
 0x300 PF: > { %s3903_s29 = sld [smem:[#allocation15_spill]]  ;;  %s3904_s14 = sld [smem:[#allocation17_spill]] }
 0x301   : > { %p2500_p5 = scmp.ge.s32.totalorder %s2968_s28, 2 }
 0x306   : > { %s2054_s19 = sand.u32 1, %s3903_s29   ;;  %p3905_p9 = scmp.ne.s32.totalorder %s3904_s14, 0 }
 0x307   : > { %s2055_s25 = scalar_lea.sflag [#allocation4], %s2054_s19 }
 0x308   : > { %p2488_p0 = pnand %p2500_p5, %p3905_p9 }
 0x30a   : > { %2931 = dma.done.wait (!%p2488_p0), %s2055_s25, 2048  }
 0x30b   : > { %2933 = vsyncadd (!%p2488_p0), %s2055_s25, 4294965248  ;;  %s3906_s12 = sadd.s32 4294967294, %s2968_s28  }
 0x30c   : > { %s2063_s16 = sand.u32 1, %s3906_s12  }
 0x30d   : > { %s2064_s18 = scalar_lea.sflag [#allocation9], %s2063_s16 }
 0x30e   : > { %2935 = dma.done.wait (!%p2488_p0), %s2064_s18, 4096  }
 0x30f   : > { %2937 = vsyncadd (!%p2488_p0), %s2064_s18, 4294963200  ;;  %s27_s28 = sadd.s32 1, %s2968_s28   ;;  %s3907_s24 = sld [smem:[#allocation16_spill]] }
 0x310   : > { %p24_p11 = scmp.ge.s32.totalorder %s27_s28, 6   ;;  %s3908_s26 = sld [smem:[#allocation18_spill]] }
 0x311   : > { %s3909_s7 = sld [smem:[#allocation19_spill]]  ;;  %s3910_s21 = smov %s2944_s22 }
 0x312   : > { %s3911_s22 = smov %s2948_s23  ;;  %s3912_s23 = smov %s3136_s8 }
 0x313   : > { %s3913_s25 = smov %s2964_s27  ;;  %26 = sbr.rel (!%p24_p11) target bundleno = 14 (0xe), region = 117 }
 0x317   : > { %s3914_s27 = smov %s3909_s7 }
 0x31a   :  { %2078 = vsyncpa [#allocation3], 1 }
 0x31b   :  { %2080 = vsyncpa [#allocation3 + $0x1], 1 }
 0x31c   :  { %2081 = vsyncpa [#allocation6], 1 }
 0x31d   :  { %2082 = vsyncpa [#allocation4], 1 }
 0x31e   :  { %2084 = vsyncpa [#allocation4 + $0x1], 1 }
 0x31f   :  { %2085 = vsyncpa [#allocation9], 1 }
 0x320   :  { %2087 = vsyncpa [#allocation9 + $0x1], 1 }

</bundles_post_ra>
